<compile_context>
chip_gen: v6e
topology: v6e:2x2x1
jax: 0.10.0
libtpu: 0.0.40
codegen_flags: <defaults>
</compile_context>

<pallas_src>
import numpy as np
import jax
import jax.numpy as jnp
from jax import lax
from jax.experimental import pallas as pl
from jax.experimental.pallas import tpu as pltpu


# ----------------------------- fused Pallas kernel --------------------------

def net_kernel(xs_ref, m1_ref, b1_ref, m2_ref, b2_ref,
               wf1_ref, bf1_ref, wf2_ref, bf2_ref,
               o_ref, h1_scr, h2_scr):
    """One image per grid step.

    xs_ref : (1, 4, 7, 28)  input, H-phase-4 split: xs[0, a, m, w] = x[4m+a, w]
    m1_ref : (5, 28, 256)   conv1 folded weights, out lane = d*128 + s*10 + c
    b1_ref : (1, 128)       conv1 bias tiled over pooled W (lanes >= 120 are 0)
    m2_ref : (5, 128, 256)  conv2 folded weights, out lane = d*128 + t*20 + o
    b2_ref : (1, 128)       conv2 bias tiled over pooled W (lanes >= 80 are 0)
    wf1_ref: (4, 128, 50)   fc1 weights, rows permuted to (pooled_h, t*20 + o)
    bf1_ref: (1, 50)   wf2_ref: (50, 10)   bf2_ref: (1, 10)
    o_ref  : (1, 1, 10)
    h1_scr : (2, 6, 128) scratch  (pooled conv1 output, split by row parity)
    h2_scr : (4, 128)    scratch  (pooled conv2 output)
    """
    f32 = jnp.float32

    def pool_bias_relu(a, b, bias):
        m = jnp.maximum(a, b)                        # max over pool-H offset
        m = jnp.maximum(m[:, 0:128], m[:, 128:256])  # max over pool-W offset (aligned halves)
        return jnp.maximum(m + bias, 0.0)            # conv bias + ReLU

    # ---- conv1:  y[p][m, d*128 + s*10 + c] = conv1_raw[4m+p, 2s+d, c] -------
    y = [None] * 4
    for ki in range(5):
        m1k = m1_ref[ki]                                        # (28, 256)
        for p in range(4):
            a, off = (p + ki) % 4, (p + ki) // 4
            xr = xs_ref[0, a, pl.ds(off, 6), :]                 # (6, 28)
            part = jnp.dot(xr, m1k, preferred_element_type=f32)
            y[p] = part if y[p] is None else y[p] + part

    b1 = b1_ref[...]
    h1_scr[0] = pool_bias_relu(y[0], y[1], b1)   # pooled rows 0, 2, ..., 10
    h1_scr[1] = pool_bias_relu(y[2], y[3], b1)   # pooled rows 1, 3, ..., 11

    # ---- conv2:  z[d][v, d2*128 + t*20 + o] = conv2_raw[2v+d, 2t+d2, o] -----
    z = [None, None]
    for ki in range(5):
        m2k = m2_ref[ki]                                        # (128, 256)
        for d in range(2):
            par, off = (d + ki) % 2, (d + ki) // 2
            hr = h1_scr[par, pl.ds(off, 4), :]                  # (4, 128)
            part = jnp.dot(hr, m2k, preferred_element_type=f32)
            z[d] = part if z[d] is None else z[d] + part

    h2_scr[...] = pool_bias_relu(z[0], z[1], b2_ref[...])       # (4, 128)

    # ---- FC1 -> FC2 -> sigmoid ----------------------------------------------
    acc = None
    for u in range(4):
        part = jnp.dot(h2_scr[pl.ds(u, 1), :], wf1_ref[u],
                       preferred_element_type=f32)              # (1, 50)
        acc = part if acc is None else acc + part
    z1 = acc + bf1_ref[...]                                     # (1, 50)
    z2 = jnp.dot(z1, wf2_ref[...], preferred_element_type=f32) + bf2_ref[...]
    o_ref[...] = (1.0 / (1.0 + jnp.exp(-z2))).reshape(1, 1, 10)


# ----------------------- trace-time weight folding (XLA) --------------------

def _fold_conv1(wc1, bc1):
    # M1[ki][w, d*128 + s*10 + c] = wc1[c, 0, ki, w - (2s + d)]  (0 outside taps)
    w = np.arange(28).reshape(28, 1, 1, 1)
    d = np.arange(2).reshape(1, 2, 1, 1)
    s = np.arange(12).reshape(1, 1, 12, 1)
    k = np.arange(5).reshape(1, 1, 1, 5)
    sel = jnp.asarray((w == 2 * s + d + k).astype(np.float32))      # (28, 2, 12, 5)
    m1 = jnp.einsum('wdsk,cik->iwdsc', sel, wc1.reshape(10, 5, 5))  # (5, 28, 2, 12, 10)
    m1 = jnp.pad(m1.reshape(5, 28, 2, 120), ((0, 0), (0, 0), (0, 0), (0, 8)))
    b1 = jnp.pad(jnp.tile(bc1, 12), (0, 8)).reshape(1, 128)
    return m1.reshape(5, 28, 256), b1


def _fold_conv2(wc2, bc2):
    # M2[ki][s*10 + c, d*128 + t*20 + o] = wc2[o, c, ki, s - (2t + d)]
    s = np.arange(12).reshape(12, 1, 1, 1)
    d = np.arange(2).reshape(1, 2, 1, 1)
    t = np.arange(4).reshape(1, 1, 4, 1)
    k = np.arange(5).reshape(1, 1, 1, 5)
    sel = jnp.asarray((s == 2 * t + d + k).astype(np.float32))      # (12, 2, 4, 5)
    m2 = jnp.einsum('sdtk,ocik->iscdto', sel, wc2)                  # (5, 12, 10, 2, 4, 20)
    m2 = jnp.pad(m2.reshape(5, 120, 2, 80), ((0, 0), (0, 8), (0, 0), (0, 48)))
    b2 = jnp.pad(jnp.tile(bc2, 4), (0, 48)).reshape(1, 128)
    return m2.reshape(5, 128, 256), b2


def _fold_fc1(wf1):
    # Reorder rows from torch NCHW flatten (c*16 + h*4 + w) to the kernel's
    # native (h, lane = w*20 + c) layout; zero-pad each h-group to 128 lanes.
    wf1k = wf1.reshape(20, 4, 4, 50).transpose(1, 2, 0, 3).reshape(4, 80, 50)
    return jnp.pad(wf1k, ((0, 0), (0, 48), (0, 0)))                 # (4, 128, 50)


def net_forward(x_nchw, params):
    (wc1, bc1, wc2, bc2, wf1, bf1, wf2, bf2) = params
    N = x_nchw.shape[0]
    assert x_nchw.shape[1:] == (1, 28, 28), "Net expects (N, 1, 28, 28) input"
    f32 = jnp.float32

    # Input: drop channel dim, split H by phase-4 so every in-kernel access is a
    # contiguous static slice:  xs[n, a, m, w] = x[n, 0, 4m + a, w]
    xs = x_nchw.reshape(N, 7, 4, 28).transpose(0, 2, 1, 3).astype(f32)   # (N, 4, 7, 28)

    m1, b1t = _fold_conv1(wc1, bc1)
    m2, b2t = _fold_conv2(wc2, bc2)
    wf1k = _fold_fc1(wf1)
    bf1r = bf1.reshape(1, 50)
    bf2r = bf2.reshape(1, 10)

    out = pl.pallas_call(
        net_kernel,
        out_shape=jax.ShapeDtypeStruct((N, 1, 10), f32),
        grid=(N,),
        in_specs=[
            pl.BlockSpec((1, 4, 7, 28), lambda n: (n, 0, 0, 0)),   # per-image input
            pl.BlockSpec((5, 28, 256), lambda n: (0, 0, 0)),       # conv1 folded W (resident)
            pl.BlockSpec((1, 128), lambda n: (0, 0)),
            pl.BlockSpec((5, 128, 256), lambda n: (0, 0, 0)),      # conv2 folded W (resident)
            pl.BlockSpec((1, 128), lambda n: (0, 0)),
            pl.BlockSpec((4, 128, 50), lambda n: (0, 0, 0)),       # fc1 (permuted rows)
            pl.BlockSpec((1, 50), lambda n: (0, 0)),
            pl.BlockSpec((50, 10), lambda n: (0, 0)),
            pl.BlockSpec((1, 10), lambda n: (0, 0)),
        ],
        out_specs=pl.BlockSpec((1, 1, 10), lambda n: (n, 0, 0)),
        scratch_shapes=[pltpu.VMEM((2, 6, 128), f32),
                        pltpu.VMEM((4, 128), f32)],
        compiler_params=pltpu.CompilerParams(
            dimension_semantics=("parallel",)),
    )(xs, m1, b1t, m2, b2t, wf1k, bf1r, wf2, bf2r)
    return out.reshape(N, 10)


# --------------------------- reference (pure JAX) ----------------------------

def net_reference(x_nchw, params):
    (wc1, bc1, wc2, bc2, wf1, bf1, wf2, bf2) = params
    dn = ('NCHW', 'OIHW', 'NCHW')

    def stage(x, w, b):
        y = lax.conv_general_dilated(x, w, (1, 1), 'VALID', dimension_numbers=dn)
        y = jnp.maximum(y + b.reshape(1, -1, 1, 1), 0.0)
        return lax.reduce_window(y, -jnp.inf, lax.max, (1, 1, 2, 2), (1, 1, 2, 2), 'VALID')

    y = stage(x_nchw, wc1, bc1)
    y = stage(y, wc2, bc2)
    y = y.reshape(y.shape[0], -1)
    y = y @ wf1 + bf1
    y = y @ wf2 + bf2
    return jax.nn.sigmoid(y)


# ---------------------------------- main -------------------------------------

def init_params(key):
    ks = jax.random.split(key, 8)

    def u(k, shape, fan_in):
        bound = 1.0 / np.sqrt(fan_in)
        return jax.random.uniform(k, shape, jnp.float32, -bound, bound)

    wc1 = u(ks[0], (10, 1, 5, 5), 1 * 5 * 5)
    bc1 = u(ks[1], (10,), 1 * 5 * 5)
    wc2 = u(ks[2], (20, 10, 5, 5), 10 * 5 * 5)
    bc2 = u(ks[3], (20,), 10 * 5 * 5)
    wf1 = u(ks[4], (320, 50), 320)   # stored pre-transposed: x @ W
    bf1 = u(ks[5], (50,), 320)
    wf2 = u(ks[6], (50, 10), 50)
    bf2 = u(ks[7], (10,), 50)
    return (wc1, bc1, wc2, bc2, wf1, bf1, wf2, bf2)


if __name__ == "__main__":
    key = jax.random.PRNGKey(0)
    kx, kp = jax.random.split(key)
    x = jax.random.normal(kx, (2, 1, 28, 28), jnp.float32)    # batch=2, MNIST-like
    params = init_params(kp)

    out = jax.block_until_ready(net_forward(x, params))
    assert out.shape == (2, 10) and out.dtype == jnp.float32

    ref = jax.block_until_ready(net_reference(x, params))
    np.testing.assert_allclose(np.asarray(out), np.asarray(ref), atol=2e-2, rtol=2e-2)

    print("KERNEL_OK")
</pallas_src>

<mosaic_0001>
module attributes {stable_mosaic.version = 11 : i64} {
  func.func @net_kernel(%arg0: i32, %arg1: memref<1x4x7x28xf32, #tpu.memory_space<vmem>>, %arg2: memref<5x28x256xf32, #tpu.memory_space<vmem>>, %arg3: memref<1x128xf32, #tpu.memory_space<vmem>>, %arg4: memref<5x128x256xf32, #tpu.memory_space<vmem>>, %arg5: memref<1x128xf32, #tpu.memory_space<vmem>>, %arg6: memref<4x128x50xf32, #tpu.memory_space<vmem>>, %arg7: memref<1x50xf32, #tpu.memory_space<vmem>>, %arg8: memref<50x10xf32, #tpu.memory_space<vmem>>, %arg9: memref<1x10xf32, #tpu.memory_space<vmem>>, %arg10: memref<1x1x10xf32, #tpu.memory_space<vmem>>, %arg11: memref<2x6x128xf32, #tpu.memory_space<vmem>>, %arg12: memref<4x128xf32, #tpu.memory_space<vmem>>) attributes {dimension_semantics = [#tpu.dimension_semantics<parallel>], iteration_bounds = array<i64: 2>, scalar_prefetch = 0 : i64, scratch_operands = 2 : i64, tpu.core_type = #tpu.core_type<tc>, window_params = [{transform_indices = @transform_0, window_bounds = array<i64: 1, 4, 7, 28>}, {pipeline_mode = #tpu.pipeline_mode<synchronous>, transform_indices = @transform_1, window_bounds = array<i64: 5, 28, 256>}, {pipeline_mode = #tpu.pipeline_mode<synchronous>, transform_indices = @transform_2, window_bounds = array<i64: 1, 128>}, {pipeline_mode = #tpu.pipeline_mode<synchronous>, transform_indices = @transform_3, window_bounds = array<i64: 5, 128, 256>}, {pipeline_mode = #tpu.pipeline_mode<synchronous>, transform_indices = @transform_4, window_bounds = array<i64: 1, 128>}, {pipeline_mode = #tpu.pipeline_mode<synchronous>, transform_indices = @transform_5, window_bounds = array<i64: 4, 128, 50>}, {pipeline_mode = #tpu.pipeline_mode<synchronous>, transform_indices = @transform_6, window_bounds = array<i64: 1, 50>}, {pipeline_mode = #tpu.pipeline_mode<synchronous>, transform_indices = @transform_7, window_bounds = array<i64: 50, 10>}, {pipeline_mode = #tpu.pipeline_mode<synchronous>, transform_indices = @transform_8, window_bounds = array<i64: 1, 10>}, {transform_indices = @transform_9, window_bounds = array<i64: 1, 1, 10>}]} {
    %c0 = arith.constant 0 : index
    %c0_0 = arith.constant 0 : index
    %c0_1 = arith.constant 0 : index
    %0 = vector.load %arg2[%c0, %c0_0, %c0_1] : memref<5x28x256xf32, #tpu.memory_space<vmem>>, vector<1x28x256xf32>
    %1 = vector.shape_cast %0 : vector<1x28x256xf32> to vector<28x256xf32>
    %c0_2 = arith.constant 0 : index
    %c0_3 = arith.constant 0 : index
    %c0_4 = arith.constant 0 : index
    %c0_5 = arith.constant 0 : index
    %2 = vector.load %arg1[%c0_2, %c0_3, %c0_4, %c0_5] : memref<1x4x7x28xf32, #tpu.memory_space<vmem>>, vector<1x1x6x28xf32>
    %3 = vector.shape_cast %2 : vector<1x1x6x28xf32> to vector<6x28xf32>
    %cst = arith.constant dense<0.000000e+00> : vector<6x256xf32>
    %4 = tpu.matmul %3, %1, %cst {dimension_numbers = #tpu.dot_dimension_numbers<[1], [0], [0], [1], [0, 0, 1, 1], [], []>} : vector<6x28xf32>, vector<28x256xf32>, vector<6x256xf32> -> vector<6x256xf32>
    %c0_6 = arith.constant 0 : index
    %c1 = arith.constant 1 : index
    %c0_7 = arith.constant 0 : index
    %c0_8 = arith.constant 0 : index
    %5 = vector.load %arg1[%c0_6, %c1, %c0_7, %c0_8] : memref<1x4x7x28xf32, #tpu.memory_space<vmem>>, vector<1x1x6x28xf32>
    %6 = vector.shape_cast %5 : vector<1x1x6x28xf32> to vector<6x28xf32>
    %cst_9 = arith.constant dense<0.000000e+00> : vector<6x256xf32>
    %7 = tpu.matmul %6, %1, %cst_9 {dimension_numbers = #tpu.dot_dimension_numbers<[1], [0], [0], [1], [0, 0, 1, 1], [], []>} : vector<6x28xf32>, vector<28x256xf32>, vector<6x256xf32> -> vector<6x256xf32>
    %c0_10 = arith.constant 0 : index
    %c2 = arith.constant 2 : index
    %c0_11 = arith.constant 0 : index
    %c0_12 = arith.constant 0 : index
    %8 = vector.load %arg1[%c0_10, %c2, %c0_11, %c0_12] : memref<1x4x7x28xf32, #tpu.memory_space<vmem>>, vector<1x1x6x28xf32>
    %9 = vector.shape_cast %8 : vector<1x1x6x28xf32> to vector<6x28xf32>
    %cst_13 = arith.constant dense<0.000000e+00> : vector<6x256xf32>
    %10 = tpu.matmul %9, %1, %cst_13 {dimension_numbers = #tpu.dot_dimension_numbers<[1], [0], [0], [1], [0, 0, 1, 1], [], []>} : vector<6x28xf32>, vector<28x256xf32>, vector<6x256xf32> -> vector<6x256xf32>
    %c0_14 = arith.constant 0 : index
    %c3 = arith.constant 3 : index
    %c0_15 = arith.constant 0 : index
    %c0_16 = arith.constant 0 : index
    %11 = vector.load %arg1[%c0_14, %c3, %c0_15, %c0_16] : memref<1x4x7x28xf32, #tpu.memory_space<vmem>>, vector<1x1x6x28xf32>
    %12 = vector.shape_cast %11 : vector<1x1x6x28xf32> to vector<6x28xf32>
    %cst_17 = arith.constant dense<0.000000e+00> : vector<6x256xf32>
    %13 = tpu.matmul %12, %1, %cst_17 {dimension_numbers = #tpu.dot_dimension_numbers<[1], [0], [0], [1], [0, 0, 1, 1], [], []>} : vector<6x28xf32>, vector<28x256xf32>, vector<6x256xf32> -> vector<6x256xf32>
    %c1_18 = arith.constant 1 : index
    %c0_19 = arith.constant 0 : index
    %c0_20 = arith.constant 0 : index
    %14 = vector.load %arg2[%c1_18, %c0_19, %c0_20] : memref<5x28x256xf32, #tpu.memory_space<vmem>>, vector<1x28x256xf32>
    %15 = vector.shape_cast %14 : vector<1x28x256xf32> to vector<28x256xf32>
    %c0_21 = arith.constant 0 : index
    %c1_22 = arith.constant 1 : index
    %c0_23 = arith.constant 0 : index
    %c0_24 = arith.constant 0 : index
    %16 = vector.load %arg1[%c0_21, %c1_22, %c0_23, %c0_24] : memref<1x4x7x28xf32, #tpu.memory_space<vmem>>, vector<1x1x6x28xf32>
    %17 = vector.shape_cast %16 : vector<1x1x6x28xf32> to vector<6x28xf32>
    %cst_25 = arith.constant dense<0.000000e+00> : vector<6x256xf32>
    %18 = tpu.matmul %17, %15, %cst_25 {dimension_numbers = #tpu.dot_dimension_numbers<[1], [0], [0], [1], [0, 0, 1, 1], [], []>} : vector<6x28xf32>, vector<28x256xf32>, vector<6x256xf32> -> vector<6x256xf32>
    %19 = arith.addf %4, %18 : vector<6x256xf32>
    %c0_26 = arith.constant 0 : index
    %c2_27 = arith.constant 2 : index
    %c0_28 = arith.constant 0 : index
    %c0_29 = arith.constant 0 : index
    %20 = vector.load %arg1[%c0_26, %c2_27, %c0_28, %c0_29] : memref<1x4x7x28xf32, #tpu.memory_space<vmem>>, vector<1x1x6x28xf32>
    %21 = vector.shape_cast %20 : vector<1x1x6x28xf32> to vector<6x28xf32>
    %cst_30 = arith.constant dense<0.000000e+00> : vector<6x256xf32>
    %22 = tpu.matmul %21, %15, %cst_30 {dimension_numbers = #tpu.dot_dimension_numbers<[1], [0], [0], [1], [0, 0, 1, 1], [], []>} : vector<6x28xf32>, vector<28x256xf32>, vector<6x256xf32> -> vector<6x256xf32>
    %23 = arith.addf %7, %22 : vector<6x256xf32>
    %c0_31 = arith.constant 0 : index
    %c3_32 = arith.constant 3 : index
    %c0_33 = arith.constant 0 : index
    %c0_34 = arith.constant 0 : index
    %24 = vector.load %arg1[%c0_31, %c3_32, %c0_33, %c0_34] : memref<1x4x7x28xf32, #tpu.memory_space<vmem>>, vector<1x1x6x28xf32>
    %25 = vector.shape_cast %24 : vector<1x1x6x28xf32> to vector<6x28xf32>
    %cst_35 = arith.constant dense<0.000000e+00> : vector<6x256xf32>
    %26 = tpu.matmul %25, %15, %cst_35 {dimension_numbers = #tpu.dot_dimension_numbers<[1], [0], [0], [1], [0, 0, 1, 1], [], []>} : vector<6x28xf32>, vector<28x256xf32>, vector<6x256xf32> -> vector<6x256xf32>
    %27 = arith.addf %10, %26 : vector<6x256xf32>
    %c0_36 = arith.constant 0 : index
    %c0_37 = arith.constant 0 : index
    %c1_38 = arith.constant 1 : index
    %c0_39 = arith.constant 0 : index
    %28 = vector.load %arg1[%c0_36, %c0_37, %c1_38, %c0_39] : memref<1x4x7x28xf32, #tpu.memory_space<vmem>>, vector<1x1x6x28xf32>
    %29 = vector.shape_cast %28 : vector<1x1x6x28xf32> to vector<6x28xf32>
    %cst_40 = arith.constant dense<0.000000e+00> : vector<6x256xf32>
    %30 = tpu.matmul %29, %15, %cst_40 {dimension_numbers = #tpu.dot_dimension_numbers<[1], [0], [0], [1], [0, 0, 1, 1], [], []>} : vector<6x28xf32>, vector<28x256xf32>, vector<6x256xf32> -> vector<6x256xf32>
    %31 = arith.addf %13, %30 : vector<6x256xf32>
    %c2_41 = arith.constant 2 : index
    %c0_42 = arith.constant 0 : index
    %c0_43 = arith.constant 0 : index
    %32 = vector.load %arg2[%c2_41, %c0_42, %c0_43] : memref<5x28x256xf32, #tpu.memory_space<vmem>>, vector<1x28x256xf32>
    %33 = vector.shape_cast %32 : vector<1x28x256xf32> to vector<28x256xf32>
    %c0_44 = arith.constant 0 : index
    %c2_45 = arith.constant 2 : index
    %c0_46 = arith.constant 0 : index
    %c0_47 = arith.constant 0 : index
    %34 = vector.load %arg1[%c0_44, %c2_45, %c0_46, %c0_47] : memref<1x4x7x28xf32, #tpu.memory_space<vmem>>, vector<1x1x6x28xf32>
    %35 = vector.shape_cast %34 : vector<1x1x6x28xf32> to vector<6x28xf32>
    %cst_48 = arith.constant dense<0.000000e+00> : vector<6x256xf32>
    %36 = tpu.matmul %35, %33, %cst_48 {dimension_numbers = #tpu.dot_dimension_numbers<[1], [0], [0], [1], [0, 0, 1, 1], [], []>} : vector<6x28xf32>, vector<28x256xf32>, vector<6x256xf32> -> vector<6x256xf32>
    %37 = arith.addf %19, %36 : vector<6x256xf32>
    %c0_49 = arith.constant 0 : index
    %c3_50 = arith.constant 3 : index
    %c0_51 = arith.constant 0 : index
    %c0_52 = arith.constant 0 : index
    %38 = vector.load %arg1[%c0_49, %c3_50, %c0_51, %c0_52] : memref<1x4x7x28xf32, #tpu.memory_space<vmem>>, vector<1x1x6x28xf32>
    %39 = vector.shape_cast %38 : vector<1x1x6x28xf32> to vector<6x28xf32>
    %cst_53 = arith.constant dense<0.000000e+00> : vector<6x256xf32>
    %40 = tpu.matmul %39, %33, %cst_53 {dimension_numbers = #tpu.dot_dimension_numbers<[1], [0], [0], [1], [0, 0, 1, 1], [], []>} : vector<6x28xf32>, vector<28x256xf32>, vector<6x256xf32> -> vector<6x256xf32>
    %41 = arith.addf %23, %40 : vector<6x256xf32>
    %c0_54 = arith.constant 0 : index
    %c0_55 = arith.constant 0 : index
    %c1_56 = arith.constant 1 : index
    %c0_57 = arith.constant 0 : index
    %42 = vector.load %arg1[%c0_54, %c0_55, %c1_56, %c0_57] : memref<1x4x7x28xf32, #tpu.memory_space<vmem>>, vector<1x1x6x28xf32>
    %43 = vector.shape_cast %42 : vector<1x1x6x28xf32> to vector<6x28xf32>
    %cst_58 = arith.constant dense<0.000000e+00> : vector<6x256xf32>
    %44 = tpu.matmul %43, %33, %cst_58 {dimension_numbers = #tpu.dot_dimension_numbers<[1], [0], [0], [1], [0, 0, 1, 1], [], []>} : vector<6x28xf32>, vector<28x256xf32>, vector<6x256xf32> -> vector<6x256xf32>
    %45 = arith.addf %27, %44 : vector<6x256xf32>
    %c0_59 = arith.constant 0 : index
    %c1_60 = arith.constant 1 : index
    %c1_61 = arith.constant 1 : index
    %c0_62 = arith.constant 0 : index
    %46 = vector.load %arg1[%c0_59, %c1_60, %c1_61, %c0_62] : memref<1x4x7x28xf32, #tpu.memory_space<vmem>>, vector<1x1x6x28xf32>
    %47 = vector.shape_cast %46 : vector<1x1x6x28xf32> to vector<6x28xf32>
    %cst_63 = arith.constant dense<0.000000e+00> : vector<6x256xf32>
    %48 = tpu.matmul %47, %33, %cst_63 {dimension_numbers = #tpu.dot_dimension_numbers<[1], [0], [0], [1], [0, 0, 1, 1], [], []>} : vector<6x28xf32>, vector<28x256xf32>, vector<6x256xf32> -> vector<6x256xf32>
    %49 = arith.addf %31, %48 : vector<6x256xf32>
    %c3_64 = arith.constant 3 : index
    %c0_65 = arith.constant 0 : index
    %c0_66 = arith.constant 0 : index
    %50 = vector.load %arg2[%c3_64, %c0_65, %c0_66] : memref<5x28x256xf32, #tpu.memory_space<vmem>>, vector<1x28x256xf32>
    %51 = vector.shape_cast %50 : vector<1x28x256xf32> to vector<28x256xf32>
    %c0_67 = arith.constant 0 : index
    %c3_68 = arith.constant 3 : index
    %c0_69 = arith.constant 0 : index
    %c0_70 = arith.constant 0 : index
    %52 = vector.load %arg1[%c0_67, %c3_68, %c0_69, %c0_70] : memref<1x4x7x28xf32, #tpu.memory_space<vmem>>, vector<1x1x6x28xf32>
    %53 = vector.shape_cast %52 : vector<1x1x6x28xf32> to vector<6x28xf32>
    %cst_71 = arith.constant dense<0.000000e+00> : vector<6x256xf32>
    %54 = tpu.matmul %53, %51, %cst_71 {dimension_numbers = #tpu.dot_dimension_numbers<[1], [0], [0], [1], [0, 0, 1, 1], [], []>} : vector<6x28xf32>, vector<28x256xf32>, vector<6x256xf32> -> vector<6x256xf32>
    %55 = arith.addf %37, %54 : vector<6x256xf32>
    %c0_72 = arith.constant 0 : index
    %c0_73 = arith.constant 0 : index
    %c1_74 = arith.constant 1 : index
    %c0_75 = arith.constant 0 : index
    %56 = vector.load %arg1[%c0_72, %c0_73, %c1_74, %c0_75] : memref<1x4x7x28xf32, #tpu.memory_space<vmem>>, vector<1x1x6x28xf32>
    %57 = vector.shape_cast %56 : vector<1x1x6x28xf32> to vector<6x28xf32>
    %cst_76 = arith.constant dense<0.000000e+00> : vector<6x256xf32>
    %58 = tpu.matmul %57, %51, %cst_76 {dimension_numbers = #tpu.dot_dimension_numbers<[1], [0], [0], [1], [0, 0, 1, 1], [], []>} : vector<6x28xf32>, vector<28x256xf32>, vector<6x256xf32> -> vector<6x256xf32>
    %59 = arith.addf %41, %58 : vector<6x256xf32>
    %c0_77 = arith.constant 0 : index
    %c1_78 = arith.constant 1 : index
    %c1_79 = arith.constant 1 : index
    %c0_80 = arith.constant 0 : index
    %60 = vector.load %arg1[%c0_77, %c1_78, %c1_79, %c0_80] : memref<1x4x7x28xf32, #tpu.memory_space<vmem>>, vector<1x1x6x28xf32>
    %61 = vector.shape_cast %60 : vector<1x1x6x28xf32> to vector<6x28xf32>
    %cst_81 = arith.constant dense<0.000000e+00> : vector<6x256xf32>
    %62 = tpu.matmul %61, %51, %cst_81 {dimension_numbers = #tpu.dot_dimension_numbers<[1], [0], [0], [1], [0, 0, 1, 1], [], []>} : vector<6x28xf32>, vector<28x256xf32>, vector<6x256xf32> -> vector<6x256xf32>
    %63 = arith.addf %45, %62 : vector<6x256xf32>
    %c0_82 = arith.constant 0 : index
    %c2_83 = arith.constant 2 : index
    %c1_84 = arith.constant 1 : index
    %c0_85 = arith.constant 0 : index
    %64 = vector.load %arg1[%c0_82, %c2_83, %c1_84, %c0_85] : memref<1x4x7x28xf32, #tpu.memory_space<vmem>>, vector<1x1x6x28xf32>
    %65 = vector.shape_cast %64 : vector<1x1x6x28xf32> to vector<6x28xf32>
    %cst_86 = arith.constant dense<0.000000e+00> : vector<6x256xf32>
    %66 = tpu.matmul %65, %51, %cst_86 {dimension_numbers = #tpu.dot_dimension_numbers<[1], [0], [0], [1], [0, 0, 1, 1], [], []>} : vector<6x28xf32>, vector<28x256xf32>, vector<6x256xf32> -> vector<6x256xf32>
    %67 = arith.addf %49, %66 : vector<6x256xf32>
    %c4 = arith.constant 4 : index
    %c0_87 = arith.constant 0 : index
    %c0_88 = arith.constant 0 : index
    %68 = vector.load %arg2[%c4, %c0_87, %c0_88] : memref<5x28x256xf32, #tpu.memory_space<vmem>>, vector<1x28x256xf32>
    %69 = vector.shape_cast %68 : vector<1x28x256xf32> to vector<28x256xf32>
    %c0_89 = arith.constant 0 : index
    %c0_90 = arith.constant 0 : index
    %c1_91 = arith.constant 1 : index
    %c0_92 = arith.constant 0 : index
    %70 = vector.load %arg1[%c0_89, %c0_90, %c1_91, %c0_92] : memref<1x4x7x28xf32, #tpu.memory_space<vmem>>, vector<1x1x6x28xf32>
    %71 = vector.shape_cast %70 : vector<1x1x6x28xf32> to vector<6x28xf32>
    %cst_93 = arith.constant dense<0.000000e+00> : vector<6x256xf32>
    %72 = tpu.matmul %71, %69, %cst_93 {dimension_numbers = #tpu.dot_dimension_numbers<[1], [0], [0], [1], [0, 0, 1, 1], [], []>} : vector<6x28xf32>, vector<28x256xf32>, vector<6x256xf32> -> vector<6x256xf32>
    %73 = arith.addf %55, %72 : vector<6x256xf32>
    %c0_94 = arith.constant 0 : index
    %c1_95 = arith.constant 1 : index
    %c1_96 = arith.constant 1 : index
    %c0_97 = arith.constant 0 : index
    %74 = vector.load %arg1[%c0_94, %c1_95, %c1_96, %c0_97] : memref<1x4x7x28xf32, #tpu.memory_space<vmem>>, vector<1x1x6x28xf32>
    %75 = vector.shape_cast %74 : vector<1x1x6x28xf32> to vector<6x28xf32>
    %cst_98 = arith.constant dense<0.000000e+00> : vector<6x256xf32>
    %76 = tpu.matmul %75, %69, %cst_98 {dimension_numbers = #tpu.dot_dimension_numbers<[1], [0], [0], [1], [0, 0, 1, 1], [], []>} : vector<6x28xf32>, vector<28x256xf32>, vector<6x256xf32> -> vector<6x256xf32>
    %77 = arith.addf %59, %76 : vector<6x256xf32>
    %c0_99 = arith.constant 0 : index
    %c2_100 = arith.constant 2 : index
    %c1_101 = arith.constant 1 : index
    %c0_102 = arith.constant 0 : index
    %78 = vector.load %arg1[%c0_99, %c2_100, %c1_101, %c0_102] : memref<1x4x7x28xf32, #tpu.memory_space<vmem>>, vector<1x1x6x28xf32>
    %79 = vector.shape_cast %78 : vector<1x1x6x28xf32> to vector<6x28xf32>
    %cst_103 = arith.constant dense<0.000000e+00> : vector<6x256xf32>
    %80 = tpu.matmul %79, %69, %cst_103 {dimension_numbers = #tpu.dot_dimension_numbers<[1], [0], [0], [1], [0, 0, 1, 1], [], []>} : vector<6x28xf32>, vector<28x256xf32>, vector<6x256xf32> -> vector<6x256xf32>
    %81 = arith.addf %63, %80 : vector<6x256xf32>
    %c0_104 = arith.constant 0 : index
    %c3_105 = arith.constant 3 : index
    %c1_106 = arith.constant 1 : index
    %c0_107 = arith.constant 0 : index
    %82 = vector.load %arg1[%c0_104, %c3_105, %c1_106, %c0_107] : memref<1x4x7x28xf32, #tpu.memory_space<vmem>>, vector<1x1x6x28xf32>
    %83 = vector.shape_cast %82 : vector<1x1x6x28xf32> to vector<6x28xf32>
    %cst_108 = arith.constant dense<0.000000e+00> : vector<6x256xf32>
    %84 = tpu.matmul %83, %69, %cst_108 {dimension_numbers = #tpu.dot_dimension_numbers<[1], [0], [0], [1], [0, 0, 1, 1], [], []>} : vector<6x28xf32>, vector<28x256xf32>, vector<6x256xf32> -> vector<6x256xf32>
    %85 = arith.addf %67, %84 : vector<6x256xf32>
    %c0_109 = arith.constant 0 : index
    %c0_110 = arith.constant 0 : index
    %86 = vector.load %arg3[%c0_109, %c0_110] : memref<1x128xf32, #tpu.memory_space<vmem>>, vector<1x128xf32>
    %87 = arith.maximumf %73, %77 : vector<6x256xf32>
    %88 = vector.extract_strided_slice %87 {offsets = [0, 0], sizes = [6, 128], strides = [1, 1]} : vector<6x256xf32> to vector<6x128xf32>
    %89 = vector.extract_strided_slice %87 {offsets = [0, 128], sizes = [6, 128], strides = [1, 1]} : vector<6x256xf32> to vector<6x128xf32>
    %90 = arith.maximumf %88, %89 : vector<6x128xf32>
    %91 = vector.broadcast %86 : vector<1x128xf32> to vector<6x128xf32>
    %92 = arith.addf %90, %91 : vector<6x128xf32>
    %cst_111 = arith.constant 0.000000e+00 : f32
    %93 = vector.broadcast %cst_111 : f32 to vector<6x128xf32>
    %94 = arith.maximumf %92, %93 : vector<6x128xf32>
    %c0_112 = arith.constant 0 : index
    %c0_113 = arith.constant 0 : index
    %c0_114 = arith.constant 0 : index
    %95 = vector.load %arg11[%c0_112, %c0_113, %c0_114] : memref<2x6x128xf32, #tpu.memory_space<vmem>>, vector<1x6x128xf32>
    %96 = vector.shape_cast %95 : vector<1x6x128xf32> to vector<6x128xf32>
    %97 = vector.shape_cast %94 : vector<6x128xf32> to vector<1x6x128xf32>
    tpu.vector_store %arg11[%c0_112, %c0_113, %c0_114], %97 {strides = array<i32>} : memref<2x6x128xf32, #tpu.memory_space<vmem>>, vector<1x6x128xf32>,
    %98 = arith.maximumf %81, %85 : vector<6x256xf32>
    %99 = vector.extract_strided_slice %98 {offsets = [0, 0], sizes = [6, 128], strides = [1, 1]} : vector<6x256xf32> to vector<6x128xf32>
    %100 = vector.extract_strided_slice %98 {offsets = [0, 128], sizes = [6, 128], strides = [1, 1]} : vector<6x256xf32> to vector<6x128xf32>
    %101 = arith.maximumf %99, %100 : vector<6x128xf32>
    %102 = vector.broadcast %86 : vector<1x128xf32> to vector<6x128xf32>
    %103 = arith.addf %101, %102 : vector<6x128xf32>
    %cst_115 = arith.constant 0.000000e+00 : f32
    %104 = vector.broadcast %cst_115 : f32 to vector<6x128xf32>
    %105 = arith.maximumf %103, %104 : vector<6x128xf32>
    %c1_116 = arith.constant 1 : index
    %c0_117 = arith.constant 0 : index
    %c0_118 = arith.constant 0 : index
    %106 = vector.load %arg11[%c1_116, %c0_117, %c0_118] : memref<2x6x128xf32, #tpu.memory_space<vmem>>, vector<1x6x128xf32>
    %107 = vector.shape_cast %106 : vector<1x6x128xf32> to vector<6x128xf32>
    %108 = vector.shape_cast %105 : vector<6x128xf32> to vector<1x6x128xf32>
    tpu.vector_store %arg11[%c1_116, %c0_117, %c0_118], %108 {strides = array<i32>} : memref<2x6x128xf32, #tpu.memory_space<vmem>>, vector<1x6x128xf32>,
    %c0_119 = arith.constant 0 : index
    %c0_120 = arith.constant 0 : index
    %c0_121 = arith.constant 0 : index
    %109 = vector.load %arg4[%c0_119, %c0_120, %c0_121] : memref<5x128x256xf32, #tpu.memory_space<vmem>>, vector<1x128x256xf32>
    %110 = vector.shape_cast %109 : vector<1x128x256xf32> to vector<128x256xf32>
    %c0_122 = arith.constant 0 : index
    %c0_123 = arith.constant 0 : index
    %c0_124 = arith.constant 0 : index
    %111 = vector.load %arg11[%c0_122, %c0_123, %c0_124] : memref<2x6x128xf32, #tpu.memory_space<vmem>>, vector<1x4x128xf32>
    %112 = vector.shape_cast %111 : vector<1x4x128xf32> to vector<4x128xf32>
    %cst_125 = arith.constant dense<0.000000e+00> : vector<4x256xf32>
    %113 = tpu.matmul %112, %110, %cst_125 {dimension_numbers = #tpu.dot_dimension_numbers<[1], [0], [0], [1], [0, 0, 1, 1], [], []>} : vector<4x128xf32>, vector<128x256xf32>, vector<4x256xf32> -> vector<4x256xf32>
    %c1_126 = arith.constant 1 : index
    %c0_127 = arith.constant 0 : index
    %c0_128 = arith.constant 0 : index
    %114 = vector.load %arg11[%c1_126, %c0_127, %c0_128] : memref<2x6x128xf32, #tpu.memory_space<vmem>>, vector<1x4x128xf32>
    %115 = vector.shape_cast %114 : vector<1x4x128xf32> to vector<4x128xf32>
    %cst_129 = arith.constant dense<0.000000e+00> : vector<4x256xf32>
    %116 = tpu.matmul %115, %110, %cst_129 {dimension_numbers = #tpu.dot_dimension_numbers<[1], [0], [0], [1], [0, 0, 1, 1], [], []>} : vector<4x128xf32>, vector<128x256xf32>, vector<4x256xf32> -> vector<4x256xf32>
    %c1_130 = arith.constant 1 : index
    %c0_131 = arith.constant 0 : index
    %c0_132 = arith.constant 0 : index
    %117 = vector.load %arg4[%c1_130, %c0_131, %c0_132] : memref<5x128x256xf32, #tpu.memory_space<vmem>>, vector<1x128x256xf32>
    %118 = vector.shape_cast %117 : vector<1x128x256xf32> to vector<128x256xf32>
    %c1_133 = arith.constant 1 : index
    %c0_134 = arith.constant 0 : index
    %c0_135 = arith.constant 0 : index
    %119 = vector.load %arg11[%c1_133, %c0_134, %c0_135] : memref<2x6x128xf32, #tpu.memory_space<vmem>>, vector<1x4x128xf32>
    %120 = vector.shape_cast %119 : vector<1x4x128xf32> to vector<4x128xf32>
    %cst_136 = arith.constant dense<0.000000e+00> : vector<4x256xf32>
    %121 = tpu.matmul %120, %118, %cst_136 {dimension_numbers = #tpu.dot_dimension_numbers<[1], [0], [0], [1], [0, 0, 1, 1], [], []>} : vector<4x128xf32>, vector<128x256xf32>, vector<4x256xf32> -> vector<4x256xf32>
    %122 = arith.addf %113, %121 : vector<4x256xf32>
    %c0_137 = arith.constant 0 : index
    %c1_138 = arith.constant 1 : index
    %c0_139 = arith.constant 0 : index
    %123 = vector.load %arg11[%c0_137, %c1_138, %c0_139] : memref<2x6x128xf32, #tpu.memory_space<vmem>>, vector<1x4x128xf32>
    %124 = vector.shape_cast %123 : vector<1x4x128xf32> to vector<4x128xf32>
    %cst_140 = arith.constant dense<0.000000e+00> : vector<4x256xf32>
    %125 = tpu.matmul %124, %118, %cst_140 {dimension_numbers = #tpu.dot_dimension_numbers<[1], [0], [0], [1], [0, 0, 1, 1], [], []>} : vector<4x128xf32>, vector<128x256xf32>, vector<4x256xf32> -> vector<4x256xf32>
    %126 = arith.addf %116, %125 : vector<4x256xf32>
    %c2_141 = arith.constant 2 : index
    %c0_142 = arith.constant 0 : index
    %c0_143 = arith.constant 0 : index
    %127 = vector.load %arg4[%c2_141, %c0_142, %c0_143] : memref<5x128x256xf32, #tpu.memory_space<vmem>>, vector<1x128x256xf32>
    %128 = vector.shape_cast %127 : vector<1x128x256xf32> to vector<128x256xf32>
    %c0_144 = arith.constant 0 : index
    %c1_145 = arith.constant 1 : index
    %c0_146 = arith.constant 0 : index
    %129 = vector.load %arg11[%c0_144, %c1_145, %c0_146] : memref<2x6x128xf32, #tpu.memory_space<vmem>>, vector<1x4x128xf32>
    %130 = vector.shape_cast %129 : vector<1x4x128xf32> to vector<4x128xf32>
    %cst_147 = arith.constant dense<0.000000e+00> : vector<4x256xf32>
    %131 = tpu.matmul %130, %128, %cst_147 {dimension_numbers = #tpu.dot_dimension_numbers<[1], [0], [0], [1], [0, 0, 1, 1], [], []>} : vector<4x128xf32>, vector<128x256xf32>, vector<4x256xf32> -> vector<4x256xf32>
    %132 = arith.addf %122, %131 : vector<4x256xf32>
    %c1_148 = arith.constant 1 : index
    %c1_149 = arith.constant 1 : index
    %c0_150 = arith.constant 0 : index
    %133 = vector.load %arg11[%c1_148, %c1_149, %c0_150] : memref<2x6x128xf32, #tpu.memory_space<vmem>>, vector<1x4x128xf32>
    %134 = vector.shape_cast %133 : vector<1x4x128xf32> to vector<4x128xf32>
    %cst_151 = arith.constant dense<0.000000e+00> : vector<4x256xf32>
    %135 = tpu.matmul %134, %128, %cst_151 {dimension_numbers = #tpu.dot_dimension_numbers<[1], [0], [0], [1], [0, 0, 1, 1], [], []>} : vector<4x128xf32>, vector<128x256xf32>, vector<4x256xf32> -> vector<4x256xf32>
    %136 = arith.addf %126, %135 : vector<4x256xf32>
    %c3_152 = arith.constant 3 : index
    %c0_153 = arith.constant 0 : index
    %c0_154 = arith.constant 0 : index
    %137 = vector.load %arg4[%c3_152, %c0_153, %c0_154] : memref<5x128x256xf32, #tpu.memory_space<vmem>>, vector<1x128x256xf32>
    %138 = vector.shape_cast %137 : vector<1x128x256xf32> to vector<128x256xf32>
    %c1_155 = arith.constant 1 : index
    %c1_156 = arith.constant 1 : index
    %c0_157 = arith.constant 0 : index
    %139 = vector.load %arg11[%c1_155, %c1_156, %c0_157] : memref<2x6x128xf32, #tpu.memory_space<vmem>>, vector<1x4x128xf32>
    %140 = vector.shape_cast %139 : vector<1x4x128xf32> to vector<4x128xf32>
    %cst_158 = arith.constant dense<0.000000e+00> : vector<4x256xf32>
    %141 = tpu.matmul %140, %138, %cst_158 {dimension_numbers = #tpu.dot_dimension_numbers<[1], [0], [0], [1], [0, 0, 1, 1], [], []>} : vector<4x128xf32>, vector<128x256xf32>, vector<4x256xf32> -> vector<4x256xf32>
    %142 = arith.addf %132, %141 : vector<4x256xf32>
    %c0_159 = arith.constant 0 : index
    %c2_160 = arith.constant 2 : index
    %c0_161 = arith.constant 0 : index
    %143 = vector.load %arg11[%c0_159, %c2_160, %c0_161] : memref<2x6x128xf32, #tpu.memory_space<vmem>>, vector<1x4x128xf32>
    %144 = vector.shape_cast %143 : vector<1x4x128xf32> to vector<4x128xf32>
    %cst_162 = arith.constant dense<0.000000e+00> : vector<4x256xf32>
    %145 = tpu.matmul %144, %138, %cst_162 {dimension_numbers = #tpu.dot_dimension_numbers<[1], [0], [0], [1], [0, 0, 1, 1], [], []>} : vector<4x128xf32>, vector<128x256xf32>, vector<4x256xf32> -> vector<4x256xf32>
    %146 = arith.addf %136, %145 : vector<4x256xf32>
    %c4_163 = arith.constant 4 : index
    %c0_164 = arith.constant 0 : index
    %c0_165 = arith.constant 0 : index
    %147 = vector.load %arg4[%c4_163, %c0_164, %c0_165] : memref<5x128x256xf32, #tpu.memory_space<vmem>>, vector<1x128x256xf32>
    %148 = vector.shape_cast %147 : vector<1x128x256xf32> to vector<128x256xf32>
    %c0_166 = arith.constant 0 : index
    %c2_167 = arith.constant 2 : index
    %c0_168 = arith.constant 0 : index
    %149 = vector.load %arg11[%c0_166, %c2_167, %c0_168] : memref<2x6x128xf32, #tpu.memory_space<vmem>>, vector<1x4x128xf32>
    %150 = vector.shape_cast %149 : vector<1x4x128xf32> to vector<4x128xf32>
    %cst_169 = arith.constant dense<0.000000e+00> : vector<4x256xf32>
    %151 = tpu.matmul %150, %148, %cst_169 {dimension_numbers = #tpu.dot_dimension_numbers<[1], [0], [0], [1], [0, 0, 1, 1], [], []>} : vector<4x128xf32>, vector<128x256xf32>, vector<4x256xf32> -> vector<4x256xf32>
    %152 = arith.addf %142, %151 : vector<4x256xf32>
    %c1_170 = arith.constant 1 : index
    %c2_171 = arith.constant 2 : index
    %c0_172 = arith.constant 0 : index
    %153 = vector.load %arg11[%c1_170, %c2_171, %c0_172] : memref<2x6x128xf32, #tpu.memory_space<vmem>>, vector<1x4x128xf32>
    %154 = vector.shape_cast %153 : vector<1x4x128xf32> to vector<4x128xf32>
    %cst_173 = arith.constant dense<0.000000e+00> : vector<4x256xf32>
    %155 = tpu.matmul %154, %148, %cst_173 {dimension_numbers = #tpu.dot_dimension_numbers<[1], [0], [0], [1], [0, 0, 1, 1], [], []>} : vector<4x128xf32>, vector<128x256xf32>, vector<4x256xf32> -> vector<4x256xf32>
    %156 = arith.addf %146, %155 : vector<4x256xf32>
    %c0_174 = arith.constant 0 : index
    %c0_175 = arith.constant 0 : index
    %157 = vector.load %arg5[%c0_174, %c0_175] : memref<1x128xf32, #tpu.memory_space<vmem>>, vector<1x128xf32>
    %158 = arith.maximumf %152, %156 : vector<4x256xf32>
    %159 = vector.extract_strided_slice %158 {offsets = [0, 0], sizes = [4, 128], strides = [1, 1]} : vector<4x256xf32> to vector<4x128xf32>
    %160 = vector.extract_strided_slice %158 {offsets = [0, 128], sizes = [4, 128], strides = [1, 1]} : vector<4x256xf32> to vector<4x128xf32>
    %161 = arith.maximumf %159, %160 : vector<4x128xf32>
    %162 = vector.broadcast %157 : vector<1x128xf32> to vector<4x128xf32>
    %163 = arith.addf %161, %162 : vector<4x128xf32>
    %cst_176 = arith.constant 0.000000e+00 : f32
    %164 = vector.broadcast %cst_176 : f32 to vector<4x128xf32>
    %165 = arith.maximumf %163, %164 : vector<4x128xf32>
    %c0_177 = arith.constant 0 : index
    %c0_178 = arith.constant 0 : index
    %166 = vector.load %arg12[%c0_177, %c0_178] : memref<4x128xf32, #tpu.memory_space<vmem>>, vector<4x128xf32>
    tpu.vector_store %arg12[%c0_177, %c0_178], %165 {strides = array<i32>} : memref<4x128xf32, #tpu.memory_space<vmem>>, vector<4x128xf32>,
    %c0_179 = arith.constant 0 : index
    %c0_180 = arith.constant 0 : index
    %167 = vector.load %arg12[%c0_179, %c0_180] : memref<4x128xf32, #tpu.memory_space<vmem>>, vector<1x128xf32>
    %c0_181 = arith.constant 0 : index
    %c0_182 = arith.constant 0 : index
    %c0_183 = arith.constant 0 : index
    %168 = vector.load %arg6[%c0_181, %c0_182, %c0_183] : memref<4x128x50xf32, #tpu.memory_space<vmem>>, vector<1x128x50xf32>
    %169 = vector.shape_cast %168 : vector<1x128x50xf32> to vector<128x50xf32>
    %cst_184 = arith.constant dense<0.000000e+00> : vector<1x50xf32>
    %170 = tpu.matmul %167, %169, %cst_184 {dimension_numbers = #tpu.dot_dimension_numbers<[1], [0], [0], [1], [0, 0, 1, 1], [], []>} : vector<1x128xf32>, vector<128x50xf32>, vector<1x50xf32> -> vector<1x50xf32>
    %c1_185 = arith.constant 1 : index
    %c0_186 = arith.constant 0 : index
    %171 = vector.load %arg12[%c1_185, %c0_186] : memref<4x128xf32, #tpu.memory_space<vmem>>, vector<1x128xf32>
    %c1_187 = arith.constant 1 : index
    %c0_188 = arith.constant 0 : index
    %c0_189 = arith.constant 0 : index
    %172 = vector.load %arg6[%c1_187, %c0_188, %c0_189] : memref<4x128x50xf32, #tpu.memory_space<vmem>>, vector<1x128x50xf32>
    %173 = vector.shape_cast %172 : vector<1x128x50xf32> to vector<128x50xf32>
    %cst_190 = arith.constant dense<0.000000e+00> : vector<1x50xf32>
    %174 = tpu.matmul %171, %173, %cst_190 {dimension_numbers = #tpu.dot_dimension_numbers<[1], [0], [0], [1], [0, 0, 1, 1], [], []>} : vector<1x128xf32>, vector<128x50xf32>, vector<1x50xf32> -> vector<1x50xf32>
    %175 = arith.addf %170, %174 : vector<1x50xf32>
    %c2_191 = arith.constant 2 : index
    %c0_192 = arith.constant 0 : index
    %176 = vector.load %arg12[%c2_191, %c0_192] : memref<4x128xf32, #tpu.memory_space<vmem>>, vector<1x128xf32>
    %c2_193 = arith.constant 2 : index
    %c0_194 = arith.constant 0 : index
    %c0_195 = arith.constant 0 : index
    %177 = vector.load %arg6[%c2_193, %c0_194, %c0_195] : memref<4x128x50xf32, #tpu.memory_space<vmem>>, vector<1x128x50xf32>
    %178 = vector.shape_cast %177 : vector<1x128x50xf32> to vector<128x50xf32>
    %cst_196 = arith.constant dense<0.000000e+00> : vector<1x50xf32>
    %179 = tpu.matmul %176, %178, %cst_196 {dimension_numbers = #tpu.dot_dimension_numbers<[1], [0], [0], [1], [0, 0, 1, 1], [], []>} : vector<1x128xf32>, vector<128x50xf32>, vector<1x50xf32> -> vector<1x50xf32>
    %180 = arith.addf %175, %179 : vector<1x50xf32>
    %c3_197 = arith.constant 3 : index
    %c0_198 = arith.constant 0 : index
    %181 = vector.load %arg12[%c3_197, %c0_198] : memref<4x128xf32, #tpu.memory_space<vmem>>, vector<1x128xf32>
    %c3_199 = arith.constant 3 : index
    %c0_200 = arith.constant 0 : index
    %c0_201 = arith.constant 0 : index
    %182 = vector.load %arg6[%c3_199, %c0_200, %c0_201] : memref<4x128x50xf32, #tpu.memory_space<vmem>>, vector<1x128x50xf32>
    %183 = vector.shape_cast %182 : vector<1x128x50xf32> to vector<128x50xf32>
    %cst_202 = arith.constant dense<0.000000e+00> : vector<1x50xf32>
    %184 = tpu.matmul %181, %183, %cst_202 {dimension_numbers = #tpu.dot_dimension_numbers<[1], [0], [0], [1], [0, 0, 1, 1], [], []>} : vector<1x128xf32>, vector<128x50xf32>, vector<1x50xf32> -> vector<1x50xf32>
    %185 = arith.addf %180, %184 : vector<1x50xf32>
    %c0_203 = arith.constant 0 : index
    %c0_204 = arith.constant 0 : index
    %186 = vector.load %arg7[%c0_203, %c0_204] : memref<1x50xf32, #tpu.memory_space<vmem>>, vector<1x50xf32>
    %187 = arith.addf %185, %186 : vector<1x50xf32>
    %c0_205 = arith.constant 0 : index
    %c0_206 = arith.constant 0 : index
    %188 = vector.load %arg8[%c0_205, %c0_206] : memref<50x10xf32, #tpu.memory_space<vmem>>, vector<50x10xf32>
    %cst_207 = arith.constant dense<0.000000e+00> : vector<1x10xf32>
    %189 = tpu.matmul %187, %188, %cst_207 {dimension_numbers = #tpu.dot_dimension_numbers<[1], [0], [0], [1], [0, 0, 1, 1], [], []>} : vector<1x50xf32>, vector<50x10xf32>, vector<1x10xf32> -> vector<1x10xf32>
    %c0_208 = arith.constant 0 : index
    %c0_209 = arith.constant 0 : index
    %190 = vector.load %arg9[%c0_208, %c0_209] : memref<1x10xf32, #tpu.memory_space<vmem>>, vector<1x10xf32>
    %191 = arith.addf %189, %190 : vector<1x10xf32>
    %cst_210 = arith.constant 0.000000e+00 : f32
    %192 = vector.broadcast %cst_210 : f32 to vector<1x10xf32>
    %193 = arith.subf %192, %191 : vector<1x10xf32>
    %194 = math.exp %193 : vector<1x10xf32>
    %cst_211 = arith.constant 1.000000e+00 : f32
    %195 = vector.broadcast %cst_211 : f32 to vector<1x10xf32>
    %196 = arith.addf %195, %194 : vector<1x10xf32>
    %cst_212 = arith.constant 1.000000e+00 : f32
    %197 = vector.broadcast %cst_212 : f32 to vector<1x10xf32>
    %198 = arith.divf %197, %196 : vector<1x10xf32>
    %199 = vector.shape_cast %198 : vector<1x10xf32> to vector<1x1x10xf32>
    %c0_213 = arith.constant 0 : index
    %c0_214 = arith.constant 0 : index
    %c0_215 = arith.constant 0 : index
    %200 = vector.load %arg10[%c0_213, %c0_214, %c0_215] : memref<1x1x10xf32, #tpu.memory_space<vmem>>, vector<1x1x10xf32>
    tpu.vector_store %arg10[%c0_213, %c0_214, %c0_215], %199 {strides = array<i32>} : memref<1x1x10xf32, #tpu.memory_space<vmem>>, vector<1x1x10xf32>,
    return
  }
  func.func @transform_0(%arg0: i32) -> (i32, i32, i32, i32) {
    %c0_i32 = arith.constant 0 : i32
    %c0_i32_0 = arith.constant 0 : i32
    %c0_i32_1 = arith.constant 0 : i32
    %c0_i32_2 = arith.constant 0 : i32
    return %arg0, %c0_i32, %c0_i32_0, %c0_i32_1 : i32, i32, i32, i32
  }
  func.func @transform_1(%arg0: i32) -> (i32, i32, i32) {
    %c0_i32 = arith.constant 0 : i32
    %c0_i32_0 = arith.constant 0 : i32
    %c0_i32_1 = arith.constant 0 : i32
    %c0_i32_2 = arith.constant 0 : i32
    return %c0_i32, %c0_i32_0, %c0_i32_1 : i32, i32, i32
  }
  func.func @transform_2(%arg0: i32) -> (i32, i32) {
    %c0_i32 = arith.constant 0 : i32
    %c0_i32_0 = arith.constant 0 : i32
    %c0_i32_1 = arith.constant 0 : i32
    return %c0_i32, %c0_i32_0 : i32, i32
  }
  func.func @transform_3(%arg0: i32) -> (i32, i32, i32) {
    %c0_i32 = arith.constant 0 : i32
    %c0_i32_0 = arith.constant 0 : i32
    %c0_i32_1 = arith.constant 0 : i32
    %c0_i32_2 = arith.constant 0 : i32
    return %c0_i32, %c0_i32_0, %c0_i32_1 : i32, i32, i32
  }
  func.func @transform_4(%arg0: i32) -> (i32, i32) {
    %c0_i32 = arith.constant 0 : i32
    %c0_i32_0 = arith.constant 0 : i32
    %c0_i32_1 = arith.constant 0 : i32
    return %c0_i32, %c0_i32_0 : i32, i32
  }
  func.func @transform_5(%arg0: i32) -> (i32, i32, i32) {
    %c0_i32 = arith.constant 0 : i32
    %c0_i32_0 = arith.constant 0 : i32
    %c0_i32_1 = arith.constant 0 : i32
    %c0_i32_2 = arith.constant 0 : i32
    return %c0_i32, %c0_i32_0, %c0_i32_1 : i32, i32, i32
  }
  func.func @transform_6(%arg0: i32) -> (i32, i32) {
    %c0_i32 = arith.constant 0 : i32
    %c0_i32_0 = arith.constant 0 : i32
    %c0_i32_1 = arith.constant 0 : i32
    return %c0_i32, %c0_i32_0 : i32, i32
  }
  func.func @transform_7(%arg0: i32) -> (i32, i32) {
    %c0_i32 = arith.constant 0 : i32
    %c0_i32_0 = arith.constant 0 : i32
    %c0_i32_1 = arith.constant 0 : i32
    return %c0_i32, %c0_i32_0 : i32, i32
  }
  func.func @transform_8(%arg0: i32) -> (i32, i32) {
    %c0_i32 = arith.constant 0 : i32
    %c0_i32_0 = arith.constant 0 : i32
    %c0_i32_1 = arith.constant 0 : i32
    return %c0_i32, %c0_i32_0 : i32, i32
  }
  func.func @transform_9(%arg0: i32) -> (i32, i32, i32) {
    %c0_i32 = arith.constant 0 : i32
    %c0_i32_0 = arith.constant 0 : i32
    %c0_i32_1 = arith.constant 0 : i32
    return %arg0, %c0_i32, %c0_i32_0 : i32, i32, i32
  }
}

</mosaic_0001>

<bundles_post_ra>
// kernel: tpu_custom_call.1
= control target key start
LH: loop header
LB: loop body
LE: loop exit
PB: predicated region body
PF: predicated region fallthrough
CT: control target
= control target key end

     0   :  { %14 = vsyncpa [#allocation5], 0  ;;  %s5044_s0 = inlined_call_operand.vmem [shape: f32[2,4,7,28], index: 0, kind: input, shape index: {}]   ;;  %s5045_s1 = inlined_call_operand.vmem [shape: f32[5,28,256], index: 1, kind: input, shape index: {}]   ;;  %s5046_s2 = inlined_call_operand.vmem [shape: f32[1,128], index: 2, kind: input, shape index: {}]   ;;  %s5047_s3 = inlined_call_operand.hbm [shape: f32[5,128,256], index: 3, kind: input, shape index: {}]   ;;  %s5048_s4 = inlined_call_operand.vmem [shape: f32[1,128], index: 4, kind: input, shape index: {}]   ;;  %s5049_s5 = inlined_call_operand.vmem [shape: f32[4,128,50], index: 5, kind: input, shape index: {}]   ;;  %s5050_s6 = inlined_call_operand.vmem [shape: f32[1,50], index: 6, kind: input, shape index: {}]   ;;  %s5051_s7 = inlined_call_operand.vmem [shape: f32[50,10], index: 7, kind: input, shape index: {}]   ;;  %s5052_s8 = inlined_call_operand.vmem [shape: f32[1,10], index: 8, kind: input, shape index: {}]   ;;  %s5053_s9 = inlined_call_operand.hbm [shape: f32[2,1,10], index: 9, kind: output, shape index: {}]  }
   0x1   :  { %15 = vsyncpa [#allocation6], 0 }
   0x2   :  { %17 = vsyncpa [#allocation6 + $0x1], 0  ;;  %s3955_s30 = smov 0   ;;  %s3957_s10 = smov 0  }
   0x3   :  { %s3959_s11 = smov 0   ;;  %s3961_s12 = smov 0  }
   0x4 LB: > { %s3976_s13 = sadd.s32 4294967295, %s3897_s12   ;;  %s3354_s14 = sadd.s32 4294967294, %s3897_s12   ;;  %s3897_s12 = sphi %s3961_s12, %s5211_s12   ;;  %s3893_s11 = sphi %s3959_s11, %s5210_s11   ;;  %s3889_s10 = sphi %s3957_s10, %s5209_s10   ;;  %s3885_s30 = sphi %s3955_s30, %s5208_s30  }
   0x5   : > { %s3980_s15 = sadd.s32 1, %s3897_s12   ;;  %s224_s16 = sadd.s32 1, %s3893_s11 }
   0x6   : > { %s221_s17 = ssub.s32 %s3897_s12, %s3980_s15  ;;  %p234_p0 = scmp.ne.s32.totalorder %s3893_s11, %s3889_s10 }
   0x7   : > { %p222_p1 = scmp.eq.s32.totalorder %s221_s17, 0  ;;  %p235_p2 = scmp.eq.s32.totalorder %s3976_s13, 1 }
   0x8   : > { %p240_p3 = scmp.ne.s32.totalorder %s3889_s10, %s3885_s30  ;;  %p241_p4 = scmp.eq.s32.totalorder %s3354_s14, 1 }
   0x9   : > { %s3991_s18 = scalar_select %p222_p1, %s3893_s11, %s224_s16  }
   0xa   : > { %p3993_p5 = por %p235_p2, %p234_p0  ;;  %p3997_p6 = por %p241_p4, %p240_p3 }
   0xb   : > { %p3355_p7 = scmp.ge.s32.totalorder %s3897_s12, 1  ;;  %p248_p8 = scmp.lt.s32.totalorder %s3897_s12, 3 }
   0xc   : > { %s5106_s20 = scalar_select %p3997_p6, 1, 0 }
   0xd   : > { %p3763_p9 = scmp.eq.s32.totalorder %s3976_s13, 0  ;;  %p4004_p10 = pnand %p3355_p7, %p248_p8 }
   0xe   : > { %s3899_s22 = smov [#allocation4]  }
   0xf   : > { %s266_s23 = sshll.u32 %s3899_s22, 4  ;;  %p3755_p11 = pneg %p4004_p10  ;;  %s267_s23 = int_to_ptr.vmem [resolvable:$true] %s266_s23 }
  0x10   : > { %s3818_s24 = scalar_lea.vmem %s267_s23, 20480  ;;  %p3826_p3 = scmp.lt.s32.totalorder %s267_s23, %s267_s23 }
  0x11   : > { %p3756_p12 = pnand %p3763_p9, %p3755_p11  ;;  %p3819_p0 = scmp.ne.s32.totalorder %s267_s23, %s3818_s24 }
  0x12   : > { %p3827_p4 = scmp.lt.s32.totalorder %s3818_s24, %s3818_s24 }
  0x13   : > { %p3809_p13 = pneg %p3756_p12 }
  0x14   : > { %p3828_p6 = por %p3827_p4, %p3826_p3 }
  0x15   : > { %p3821_p1 = pnand %p3819_p0, %p3809_p13 }
  0x17   : > { %p3822_p2 = pneg %p3821_p1 }
  0x19   : > { %p3829_p7 = pnand %p3828_p6, %p3822_p2 }
  0x1b   : > { %3832 = shalt.err (!%p3829_p7)
}
  0x1c   : > { %s3900_s25 = smov 256   ;;  %s3901_s26 = smov 16  }
  0x1d   : > { %3758 = dma.hbm_to_vmem [thread:$0]  (!%p3756_p12), %s5047_s3, 20480, %s267_s23, [#allocation5], %s3900_s25, %s3900_s25, %s3901_s26  }
  0x1e   : > { %305 = sbr.rel (%p4004_p10) target bundleno = 1176 (0x498), region = 56 }
  0x23   : > { %3876 = dma.done.wait (%p3763_p9), [#allocation5], 20480  }
  0x24   : > { %3878 = vsyncadd (%p3763_p9), [#allocation5], 4294946816  ;;  %p340_p8 = scmp.lt.s32.totalorder %s3976_s13, 1  ;;  %v5054_v0 = vmov 0.0   ;;  %vm373_vm0 = vcmask 1043456   ;;  %v4036_v3 = vld [vmem:[%s5045_s1 + $0x68] sm:$0xff] }
  0x25   : > { %444 = vmatprep.mubr.f32.mxu1 %v5054_v0  ;;  %598 = vmatprep.mubr.f32.mxu0 %v5054_v0  ;;  %v3372_v1 = vld [vmem:[%s5045_s1 + $0x78] sm:$0xf]  ;;  %v4031_v2 = vld [vmem:[%s5045_s1 + $0x70] sm:$0xf]  ;;  %v3369_v4 = vld [vmem:[%s5045_s1 + $0x60] sm:$0xff]  ;;  %vm369_vm1 = vcmask 228352  }
  0x26   : > { %s341_s29 = scalar_select %p340_p8, %s3976_s13, 1  ;;  %3373 = vmatprep.subr.msk.mxu1 %vm373_vm0, %v3372_v1  ;;  %3379 = vmatprep.subr.msk.mxu0 %vm373_vm0, %v3372_v1  ;;  %v3368_v5 = vld [vmem:[%s5045_s1 + $0x58] sm:$0xff]  ;;  %v3367_v6 = vld [vmem:[%s5045_s1 + $0x50] sm:$0xff]  ;;  %v3366_v7 = vld [vmem:[%s5045_s1 + $0x48] sm:$0xff]  ;;  %vm3903_vm2 = vmmov 0   ;;  %vm3192_vm3 = vcmask 1041408  }
  0x27   : > { %3374 = vmatpush1.msk.msra.mxu1 %vm373_vm0, %v4031_v2  ;;  %3380 = vmatpush1.msk.msra.mxu0 %vm373_vm0, %v4031_v2  ;;  %v3365_v8 = vld [vmem:[%s5045_s1 + $0x40] sm:$0xff]  ;;  %v4070_v10 = vld [vmem:[%s5045_s1 + $0x38] sm:$0xf]  ;;  %v4075_v11 = vld [vmem:[%s5045_s1 + $0x30] sm:$0xf]  ;;  %vm3188_vm4 = vcmask 408576  }
  0x28   : > { %s3515_s24 = sshll.u32 %s341_s29, 5  ;;  %406 = vmatprep.subr.mxu1 %v4036_v3  ;;  %560 = vmatprep.subr.mxu0 %v4036_v3  ;;  %v4083_v13 = vld [vmem:[%s5045_s1 + $0x28] sm:$0xff]  ;;  %v4091_v14 = vld [vmem:[%s5045_s1 + $0x20] sm:$0xff]  ;;  %v4099_v15 = vld [vmem:[%s5045_s1 + $0x18] sm:$0xff]  ;;  %s338_s29 = sand.u32 1, %s3889_s10   ;;  %vm3272_vm5 = vcmask 73728  }
  0x29   : > { %s4058_s21 = scalar_lea.vmem %s5044_s0, %s3515_s24  ;;  %407 = vmatpush1.msra.mxu1 %v3369_v4  ;;  %561 = vmatpush1.msra.mxu0 %v3369_v4  ;;  %v4107_v16 = vld [vmem:[%s5045_s1 + $0x10] sm:$0xff]  ;;  %v4115_v17 = vld [vmem:[%s5045_s1 + $0x8] sm:$0xff]  ;;  %v4122_v18 = vld [vmem:[%s5045_s1] sm:$0xff]  ;;  %s3512_s14 = sshll.u32 %s3976_s13, 4 }
  0x2a   : > { %408 = vmatprep.subr.mxu1 %v3368_v5  ;;  %562 = vmatprep.subr.mxu0 %v3368_v5  ;;  %v3362_v9 = vld [vmem:[%s4058_s21 + $0x8] sm:$0x3f]  ;;  %v4078_v12 = vld [vmem:[%s4058_s21 + $0x10] sm:$0x3f]  ;;  %v353_v19 = vld [vmem:[%s4058_s21] sm:$0x3f] }
  0x2b   : > { %409 = vmatpush1.msra.mxu1 %v3367_v6  ;;  %563 = vmatpush1.msra.mxu0 %v3367_v6  ;;  %v4131_v20 = vld [vmem:[%s4058_s21 + $0x18] sm:$0x3f]  ;;  %v4158_v22 = vld [vmem:[%s4058_s21 + $0x1] sm:$0x3f]  ;;  %v4166_v23 = vld [vmem:[%s5045_s1 + $0xb0] sm:$0xf] }
  0x2c   : > { %410 = vmatprep.subr.mxu1 %v3366_v7  ;;  %564 = vmatprep.subr.mxu0 %v3366_v7  ;;  %v4154_v21 = vld [vmem:[%s5045_s1 + $0xb8] sm:$0xf]  ;;  %v4175_v24 = vld [vmem:[%s5045_s1 + $0xa8] sm:$0xff]  ;;  %v4183_v25 = vld [vmem:[%s5045_s1 + $0xa0] sm:$0xff]  ;;  %s339_s16 = scalar_lea.vmem [#allocation7], %s338_s29  ;;  %s3275_s25 = scalar_lea.sflag [#allocation6], %s338_s29 }
  0x2d   : > { %411 = vmatpush1.msra.mxu1 %v3365_v8  ;;  %565 = vmatpush1.msra.mxu0 %v3365_v8  ;;  %v4191_v26 = vld [vmem:[%s5045_s1 + $0x98] sm:$0xff]  ;;  %v4198_v27 = vld [vmem:[%s5045_s1 + $0x90] sm:$0xff]  ;;  %v4205_v28 = vld [vmem:[%s5045_s1 + $0x88] sm:$0xff]  ;;  %s3287_s17 = sshll.u32 %s339_s16, 4  ;;  %s3904_s24 = smov [#allocation7]   ;;  %s3288_s17 = int_to_ptr.vmem [resolvable:$true] %s3287_s17 }
  0x2e   : > { %3375 = vmatmul.mubr.msk.f32.vlgmr.msra.gmra.mxu1 %vm369_vm1, %v3362_v9  ;;  %3376 = vmatprep.subr.msk.mxu1 %vm373_vm0, %v4070_v10  ;;  %v4212_v29 = vld [vmem:[%s5045_s1 + $0x80] sm:$0xff]  ;;  %v4247_v30 = vld [vmem:[%s5045_s1 + $0xf8] sm:$0xf]  ;;  %v4254_v31 = vld [vmem:[%s5045_s1 + $0xf0] sm:$0xf]  ;;  %s3833_s26 = scalar_lea.vmem %s3288_s17, 16 }
  0x2f   : > { %3385 = vmatprep.subr.msk.mxu0 %vm373_vm0, %v3372_v1  ;;  %3377 = vmatpush1.msk.msra.mxu1 %vm373_vm0, %v4075_v11  ;;  %v4263_v32 = vld [vmem:[%s5045_s1 + $0xe8] sm:$0xff]  ;;  %v4272_v33 = vld [vmem:[%s5045_s1 + $0xe0] sm:$0xff]  ;;  %v4281_v34 = vld [vmem:[%s5045_s1 + $0xd8] sm:$0xff]  ;;  %p3834_p6 = scmp.ne.s32.totalorder %s3288_s17, %s3833_s26  ;;  %s3837_s27 = sshll.u32 %s3904_s24, 4  ;;  %s3838_s27 = int_to_ptr.vmem [resolvable:$false] %s3837_s27 }
  0x30   : > { %3381 = vmatmul.mubr.msk.f32.vlgmr.msra.gmra.mxu0 %vm369_vm1, %v4078_v12  ;;  %486 = vmatprep.subr.mxu1 %v4083_v13  ;;  %v4288_v35 = vld [vmem:[%s5045_s1 + $0xd0] sm:$0xff]  ;;  %v4295_v36 = vld [vmem:[%s5045_s1 + $0xc8] sm:$0xff]  ;;  %v4304_v37 = vld [vmem:[%s5045_s1 + $0xc0] sm:$0xff]  ;;  %s3839_s13 = scalar_lea.vmem %s3838_s27, 32  ;;  %p3840_p11 = scmp.lt.s32.totalorder %s3288_s17, %s3838_s27 }
  0x31   : > { %3386 = vmatpush1.msk.msra.mxu0 %vm373_vm0, %v4031_v2  ;;  %487 = vmatpush1.msra.mxu1 %v4091_v14  ;;  %v4335_v38 = vld [vmem:[%s4058_s21 + $0x9] sm:$0x3f]  ;;  %v4342_v39 = vld [vmem:[%s5045_s1 + $0x138] sm:$0xf]  ;;  %v3445_v40 = vld [vmem:[%s5045_s1 + $0x130] sm:$0xf]  ;;  %p3835_p9 = pnand %p3834_p6, %p3993_p5  ;;  %p3841_p12 = scmp.lt.s32.totalorder %s3839_s13, %s3833_s26 }
  0x32   : > { %705 = vmatprep.subr.mxu0 %v4036_v3  ;;  %488 = vmatprep.subr.mxu1 %v4099_v15  ;;  %v3444_v41 = vld [vmem:[%s5045_s1 + $0x128] sm:$0xff]  ;;  %v3443_v42 = vld [vmem:[%s5045_s1 + $0x120] sm:$0xff]  ;;  %v3442_v43 = vld [vmem:[%s5045_s1 + $0x118] sm:$0xff] }
  0x33   : > { %706 = vmatpush1.msra.mxu0 %v3369_v4  ;;  %489 = vmatpush1.msra.mxu1 %v4107_v16  ;;  %v3441_v44 = vld [vmem:[%s5045_s1 + $0x110] sm:$0xff]  ;;  %v3440_v45 = vld [vmem:[%s5045_s1 + $0x108] sm:$0xff]  ;;  %v3439_v46 = vld [vmem:[%s5045_s1 + $0x100] sm:$0xff]  ;;  %p3836_p10 = pneg %p3835_p9  ;;  %p3842_p13 = por %p3841_p12, %p3840_p11 }
  0x34   : > { %707 = vmatprep.subr.mxu0 %v3368_v5  ;;  %490 = vmatprep.subr.mxu1 %v4115_v17  ;;  %v3435_v47 = vld [vmem:[%s4058_s21 + $0x11] sm:$0x3f]  ;;  %v3456_v48 = vld [vmem:[%s4058_s21 + $0x19] sm:$0x3f]  ;;  %v4424_v50 = vld [vmem:[#allocation4 + $0xf0] sm:$0xff]  ;;  %s5009_s21 = scalar_lea.hbm %s5053_s9, %s3512_s14 }
  0x35   : > { %708 = vmatpush1.msra.mxu0 %v3367_v6  ;;  %491 = vmatpush1.msra.mxu1 %v4122_v18  ;;  %v4422_v49 = vld [vmem:[#allocation4 + $0xf8] sm:$0xff]  ;;  %v4426_v51 = vld [vmem:[#allocation4 + $0xe8] sm:$0xff]  ;;  %v4429_v52 = vld [vmem:[#allocation4 + $0xe0] sm:$0xff]  ;;  %p3843_p0 = pnand %p3842_p13, %p3836_p10 }
  0x36   : > { %709 = vmatprep.subr.mxu0 %v3366_v7  ;;  %524 = vmatprep.mubr.f32.mxu1 %v5054_v0  ;;  %v4434_v53 = vld [vmem:[#allocation4 + $0xd8] sm:$0xff]  ;;  %v4437_v54 = vld [vmem:[#allocation4 + $0xd0] sm:$0xff]  ;;  %v4440_v55 = vld [vmem:[#allocation4 + $0xc8] sm:$0xff] }
  0x37   : > { %710 = vmatpush1.msra.mxu0 %v3365_v8  ;;  %3378 = vmatmul.mubr.msk.f32.vlgmr.msra.gmra.mxu1 %vm369_vm1, %v353_v19  ;;  %v4443_v56 = vld [vmem:[#allocation4 + $0xc0] sm:$0xff]  ;;  %v4446_v57 = vld [vmem:[#allocation4 + $0x1f8] sm:$0xff]  ;;  %v4450_v59 = vld [vmem:[#allocation4 + $0x1f0] sm:$0xff] }
  0x38   : > { %3382 = vmatprep.subr.msk.mxu1 %vm373_vm0, %v4070_v10  ;;  %743 = vmatprep.mubr.f32.mxu0 %v5054_v0  ;;  %v4448_v58 = vld [vmem:[#allocation4 + $0xb8] sm:$0xff]  ;;  %v4454_v60 = vld [vmem:[#allocation4 + $0xb0] sm:$0xff]  ;;  %v4456_v61 = vld [vmem:[#allocation4 + $0x1e8] sm:$0xff] }
  0x39   : > { %3391 = vmatprep.subr.msk.mxu0 %vm373_vm0, %v3372_v1  ;;  %3383 = vmatpush1.msk.msra.mxu1 %vm373_vm0, %v4075_v11  ;;  %v4458_v62 = vld [vmem:[#allocation4 + $0xa8] sm:$0xff]  ;;  %v4462_v63 = vld [vmem:[#allocation4 + $0x1e0] sm:$0xff]  ;;  %v4520_v19 = vld [vmem:[#allocation4 + $0x58] sm:$0xff] }
  0x3a   : > { %3387 = vmatmul.mubr.msk.f32.vlgmr.msra.gmra.mxu0 %vm369_vm1, %v4131_v20  ;;  %631 = vmatprep.subr.mxu1 %v4083_v13  ;;  %v4464_v1 = vld [vmem:[#allocation4 + $0xa0] sm:$0xff]  ;;  %5126 = vst [vmem:[#allocation28_spill] sm:$0xff] %v4520_v19 }
  0x3b   : > { %3392 = vmatpush1.msk.msra.mxu0 %vm373_vm0, %v4031_v2  ;;  %632 = vmatpush1.msra.mxu1 %v4091_v14  ;;  %5108 = vst [vmem:[#allocation10_spill] sm:$0xff] %v4464_v1  ;;  %v4470_v2 = vld [vmem:[#allocation4 + $0x1d8] sm:$0xff] }
  0x3c   : > { %851 = vmatprep.subr.mxu0 %v4036_v3  ;;  %633 = vmatprep.subr.mxu1 %v4099_v15  ;;  %5109 = vst [vmem:[#allocation11_spill] sm:$0xff] %v4470_v2  ;;  %v4472_v3 = vld [vmem:[#allocation4 + $0x98] sm:$0xff] }
  0x3d   : > { %852 = vmatpush1.msra.mxu0 %v3369_v4  ;;  %634 = vmatpush1.msra.mxu1 %v4107_v16  ;;  %5110 = vst [vmem:[#allocation12_spill] sm:$0xff] %v4472_v3  ;;  %v4476_v4 = vld [vmem:[#allocation4 + $0x1d0] sm:$0xff] }
  0x3e   : > { %853 = vmatprep.subr.mxu0 %v3368_v5  ;;  %635 = vmatprep.subr.mxu1 %v4115_v17  ;;  %5111 = vst [vmem:[#allocation13_spill] sm:$0xff] %v4476_v4  ;;  %v4478_v5 = vld [vmem:[#allocation4 + $0x90] sm:$0xff] }
  0x3f   : > { %854 = vmatpush1.msra.mxu0 %v3367_v6  ;;  %636 = vmatpush1.msra.mxu1 %v4122_v18  ;;  %5112 = vst [vmem:[#allocation14_spill] sm:$0xff] %v4478_v5  ;;  %v4482_v6 = vld [vmem:[#allocation4 + $0x1c8] sm:$0xff] }
  0x40   : > { %855 = vmatprep.subr.mxu0 %v3366_v7  ;;  %669 = vmatprep.mubr.f32.mxu1 %v5054_v0  ;;  %5113 = vst [vmem:[#allocation15_spill] sm:$0xff] %v4482_v6  ;;  %v4484_v7 = vld [vmem:[#allocation4 + $0x88] sm:$0xff] }
  0x41   : > { %856 = vmatpush1.msra.mxu0 %v3365_v8  ;;  %3384 = vmatmul.mubr.msk.f32.vlgmr.msra.gmra.mxu1 %vm369_vm1, %v3362_v9  ;;  %5114 = vst [vmem:[#allocation16_spill] sm:$0xff] %v4484_v7  ;;  %v4488_v8 = vld [vmem:[#allocation4 + $0x1c0] sm:$0xff] }
  0x42   : > { %3388 = vmatprep.subr.msk.mxu1 %vm373_vm0, %v4070_v10  ;;  %889 = vmatprep.mubr.f32.mxu0 %v5054_v0  ;;  %5115 = vst [vmem:[#allocation17_spill] sm:$0xff] %v4488_v8  ;;  %v4490_v9 = vld [vmem:[#allocation4 + $0x80] sm:$0xff] }
  0x43   : > { %3405 = vmatprep.subr.msk.mxu0 %vm373_vm0, %v4154_v21  ;;  %3389 = vmatpush1.msk.msra.mxu1 %vm373_vm0, %v4075_v11  ;;  %5116 = vst [vmem:[#allocation18_spill] sm:$0xff] %v4490_v9 }
  0x44   : > { %3393 = vmatmul.mubr.msk.f32.vlgmr.msra.gmra.mxu0 %vm369_vm1, %v4158_v22  ;;  %776 = vmatprep.subr.mxu1 %v4083_v13 }
  0x45   : > { %3406 = vmatpush1.msk.msra.mxu0 %vm373_vm0, %v4166_v23  ;;  %777 = vmatpush1.msra.mxu1 %v4091_v14 }
  0x46   : > { %1008 = vmatprep.subr.mxu0 %v4175_v24  ;;  %778 = vmatprep.subr.mxu1 %v4099_v15 }
  0x47   : > { %1009 = vmatpush1.msra.mxu0 %v4183_v25  ;;  %779 = vmatpush1.msra.mxu1 %v4107_v16 }
  0x48   : > { %1010 = vmatprep.subr.mxu0 %v4191_v26  ;;  %780 = vmatprep.subr.mxu1 %v4115_v17 }
  0x49   : > { %1011 = vmatpush1.msra.mxu0 %v4198_v27  ;;  %781 = vmatpush1.msra.mxu1 %v4122_v18 }
  0x4a   : > { %1012 = vmatprep.subr.mxu0 %v4205_v28  ;;  %814 = vmatprep.mubr.f32.mxu1 %v5054_v0 }
  0x4b   : > { %1013 = vmatpush1.msra.mxu0 %v4212_v29  ;;  %1046 = vmatprep.mubr.f32.mxu0 %v5054_v0 }
  0x4c   : > { %3390 = vmatmul.mubr.msk.f32.vlgmr.msra.gmra.mxu1 %vm369_vm1, %v4078_v12  ;;  %3394 = vmatprep.subr.msk.mxu1 %vm373_vm0, %v4070_v10  ;;  %v4494_v10 = vld [vmem:[#allocation4 + $0x1b8] sm:$0xff] }
  0x4d   : > { %3407 = vmatmul.mubr.msk.f32.vlgmr.msra.gmra.mxu0 %vm369_vm1, %v4078_v12  ;;  %3411 = vmatprep.subr.msk.mxu0 %vm373_vm0, %v4154_v21  ;;  %5117 = vst [vmem:[#allocation19_spill] sm:$0xff] %v4494_v10  ;;  %v4500_v12 = vld [vmem:[#allocation4 + $0x1b0] sm:$0xff] }
  0x4e   : > { %3395 = vmatpush1.msk.msra.mxu1 %vm373_vm0, %v4075_v11  ;;  %3412 = vmatpush1.msk.msra.mxu0 %vm373_vm0, %v4166_v23  ;;  %v4496_v11 = vld [vmem:[#allocation4 + $0x78] sm:$0xff]  ;;  %5119 = vst [vmem:[#allocation21_spill] sm:$0xff] %v4500_v12 }
  0x4f   : > { %922 = vmatprep.subr.mxu1 %v4083_v13  ;;  %1154 = vmatprep.subr.mxu0 %v4175_v24  ;;  %5118 = vst [vmem:[#allocation20_spill] sm:$0xff] %v4496_v11  ;;  %v4502_v13 = vld [vmem:[#allocation4 + $0x70] sm:$0xff] }
  0x50   : > { %923 = vmatpush1.msra.mxu1 %v4091_v14  ;;  %1155 = vmatpush1.msra.mxu0 %v4183_v25  ;;  %5120 = vst [vmem:[#allocation22_spill] sm:$0xff] %v4502_v13  ;;  %v4506_v14 = vld [vmem:[#allocation4 + $0x1a8] sm:$0xff] }
  0x51   : > { %924 = vmatprep.subr.mxu1 %v4099_v15  ;;  %1156 = vmatprep.subr.mxu0 %v4191_v26  ;;  %5121 = vst [vmem:[#allocation23_spill] sm:$0xff] %v4506_v14  ;;  %v4508_v15 = vld [vmem:[#allocation4 + $0x68] sm:$0xff] }
  0x52   : > { %925 = vmatpush1.msra.mxu1 %v4107_v16  ;;  %1157 = vmatpush1.msra.mxu0 %v4198_v27  ;;  %5122 = vst [vmem:[#allocation24_spill] sm:$0xff] %v4508_v15  ;;  %v4512_v16 = vld [vmem:[#allocation4 + $0x1a0] sm:$0xff] }
  0x53   : > { %926 = vmatprep.subr.mxu1 %v4115_v17  ;;  %1158 = vmatprep.subr.mxu0 %v4205_v28  ;;  %5123 = vst [vmem:[#allocation25_spill] sm:$0xff] %v4512_v16  ;;  %v4514_v17 = vld [vmem:[#allocation4 + $0x60] sm:$0xff] }
  0x54   : > { %927 = vmatpush1.msra.mxu1 %v4122_v18  ;;  %960 = vmatprep.mubr.f32.mxu1 %v5054_v0  ;;  %5124 = vst [vmem:[#allocation26_spill] sm:$0xff] %v4514_v17  ;;  %v4518_v18 = vld [vmem:[#allocation4 + $0x198] sm:$0xff] }
  0x55   : > { %1159 = vmatpush1.msra.mxu0 %v4212_v29  ;;  %1192 = vmatprep.mubr.f32.mxu0 %v5054_v0  ;;  %5125 = vst [vmem:[#allocation27_spill] sm:$0xff] %v4518_v18 }
  0x56   : > { %3396 = vmatmul.mubr.msk.f32.vlgmr.msra.gmra.mxu1 %vm369_vm1, %v4131_v20  ;;  %3408 = vmatprep.subr.msk.mxu1 %vm373_vm0, %v4154_v21 }
  0x57   : > { %3413 = vmatmul.mubr.msk.f32.vlgmr.msra.gmra.mxu0 %vm369_vm1, %v4158_v22  ;;  %3426 = vmatprep.subr.msk.mxu0 %vm373_vm0, %v4247_v30 }
  0x58   : > { %3409 = vmatpush1.msk.msra.mxu1 %vm373_vm0, %v4166_v23  ;;  %3427 = vmatpush1.msk.msra.mxu0 %vm373_vm0, %v4254_v31 }
  0x59   : > { %1081 = vmatprep.subr.mxu1 %v4175_v24  ;;  %1319 = vmatprep.subr.mxu0 %v4263_v32 }
  0x5a   : > { %1082 = vmatpush1.msra.mxu1 %v4183_v25  ;;  %1320 = vmatpush1.msra.mxu0 %v4272_v33 }
  0x5b   : > { %1083 = vmatprep.subr.mxu1 %v4191_v26  ;;  %1321 = vmatprep.subr.mxu0 %v4281_v34 }
  0x5c   : > { %1084 = vmatpush1.msra.mxu1 %v4198_v27  ;;  %1322 = vmatpush1.msra.mxu0 %v4288_v35 }
  0x5d   : > { %1085 = vmatprep.subr.mxu1 %v4205_v28  ;;  %1323 = vmatprep.subr.mxu0 %v4295_v36 }
  0x5e   : > { %1086 = vmatpush1.msra.mxu1 %v4212_v29  ;;  %1119 = vmatprep.mubr.f32.mxu1 %v5054_v0 }
  0x5f   : > { %1324 = vmatpush1.msra.mxu0 %v4304_v37  ;;  %1357 = vmatprep.mubr.f32.mxu0 %v5054_v0 }
  0x60   : > { %3410 = vmatmul.mubr.msk.f32.vlgmr.msra.gmra.mxu1 %vm369_vm1, %v4131_v20  ;;  %3415 = vmatprep.subr.msk.mxu1 %vm373_vm0, %v4154_v21  ;;  %v4526_v21 = vld [vmem:[#allocation4 + $0x50] sm:$0xff] }
  0x61   : > { %3428 = vmatmul.mubr.msk.f32.vlgmr.msra.gmra.mxu0 %vm369_vm1, %v4131_v20  ;;  %3432 = vmatprep.subr.msk.mxu0 %vm373_vm0, %v4247_v30  ;;  %v4524_v20 = vld [vmem:[#allocation4 + $0x190] sm:$0xff]  ;;  %5128 = vst [vmem:[#allocation30_spill] sm:$0xff] %v4526_v21 }
  0x62   : > { %3416 = vmatpush1.msk.msra.mxu1 %vm373_vm0, %v4166_v23  ;;  %3433 = vmatpush1.msk.msra.mxu0 %vm373_vm0, %v4254_v31  ;;  %5127 = vst [vmem:[#allocation29_spill] sm:$0xff] %v4524_v20  ;;  %v4532_v23 = vld [vmem:[#allocation4 + $0x48] sm:$0xff] }
  0x63   : > { %1231 = vmatprep.subr.mxu1 %v4175_v24  ;;  %1465 = vmatprep.subr.mxu0 %v4263_v32  ;;  %5130 = vst [vmem:[#allocation32_spill] sm:$0xff] %v4532_v23  ;;  %v4536_v24 = vld [vmem:[#allocation4 + $0x180] sm:$0xff] }
  0x64   : > { %1232 = vmatpush1.msra.mxu1 %v4183_v25  ;;  %1466 = vmatpush1.msra.mxu0 %v4272_v33  ;;  %5131 = vst [vmem:[#allocation33_spill] sm:$0xff] %v4536_v24  ;;  %v4538_v25 = vld [vmem:[#allocation4 + $0x40] sm:$0xff] }
  0x65   : > { %1233 = vmatprep.subr.mxu1 %v4191_v26  ;;  %1467 = vmatprep.subr.mxu0 %v4281_v34  ;;  %5132 = vst [vmem:[#allocation34_spill] sm:$0xff] %v4538_v25  ;;  %v4542_v26 = vld [vmem:[#allocation4 + $0x178] sm:$0xff] }
  0x66   : > { %1234 = vmatpush1.msra.mxu1 %v4198_v27  ;;  %1468 = vmatpush1.msra.mxu0 %v4288_v35  ;;  %5133 = vst [vmem:[#allocation35_spill] sm:$0xff] %v4542_v26  ;;  %v4544_v27 = vld [vmem:[#allocation4 + $0x38] sm:$0xff] }
  0x67   : > { %1235 = vmatprep.subr.mxu1 %v4205_v28  ;;  %1469 = vmatprep.subr.mxu0 %v4295_v36  ;;  %5134 = vst [vmem:[#allocation36_spill] sm:$0xff] %v4544_v27  ;;  %v4548_v28 = vld [vmem:[#allocation4 + $0x170] sm:$0xff] }
  0x68   : > { %1236 = vmatpush1.msra.mxu1 %v4212_v29  ;;  %1269 = vmatprep.mubr.f32.mxu1 %v5054_v0  ;;  %5135 = vst [vmem:[#allocation37_spill] sm:$0xff] %v4548_v28  ;;  %v4550_v29 = vld [vmem:[#allocation4 + $0x30] sm:$0xff] }
  0x69   : > { %1470 = vmatpush1.msra.mxu0 %v4304_v37  ;;  %1503 = vmatprep.mubr.f32.mxu0 %v5054_v0  ;;  %5136 = vst [vmem:[#allocation38_spill] sm:$0xff] %v4550_v29 }
  0x6a   : > { %3417 = vmatmul.mubr.msk.f32.vlgmr.msra.gmra.mxu1 %vm369_vm1, %v4335_v38  ;;  %3429 = vmatprep.subr.msk.mxu1 %vm373_vm0, %v4247_v30 }
  0x6b   : > { %3434 = vmatmul.mubr.msk.f32.vlgmr.msra.gmra.mxu0 %vm369_vm1, %v4335_v38  ;;  %3447 = vmatprep.subr.msk.mxu0 %vm373_vm0, %v4342_v39 }
  0x6c   : > { %3430 = vmatpush1.msk.msra.mxu1 %vm373_vm0, %v4254_v31  ;;  %3448 = vmatpush1.msk.msra.mxu0 %vm373_vm0, %v3445_v40 }
  0x6d   : > { %1392 = vmatprep.subr.mxu1 %v4263_v32  ;;  %1630 = vmatprep.subr.mxu0 %v3444_v41 }
  0x6e   : > { %1393 = vmatpush1.msra.mxu1 %v4272_v33  ;;  %1631 = vmatpush1.msra.mxu0 %v3443_v42 }
  0x6f   : > { %1394 = vmatprep.subr.mxu1 %v4281_v34  ;;  %1632 = vmatprep.subr.mxu0 %v3442_v43 }
  0x70   : > { %1395 = vmatpush1.msra.mxu1 %v4288_v35  ;;  %1633 = vmatpush1.msra.mxu0 %v3441_v44 }
  0x71   : > { %1396 = vmatprep.subr.mxu1 %v4295_v36  ;;  %1634 = vmatprep.subr.mxu0 %v3440_v45 }
  0x72   : > { %1397 = vmatpush1.msra.mxu1 %v4304_v37  ;;  %1430 = vmatprep.mubr.f32.mxu1 %v5054_v0 }
  0x73   : > { %1635 = vmatpush1.msra.mxu0 %v3439_v46  ;;  %1668 = vmatprep.mubr.f32.mxu0 %v5054_v0 }
  0x74   : > { %3431 = vmatmul.mubr.msk.f32.vlgmr.msra.gmra.mxu1 %vm369_vm1, %v4158_v22  ;;  %3436 = vmatprep.subr.msk.mxu1 %vm373_vm0, %v4247_v30  ;;  %v4554_v30 = vld [vmem:[#allocation4 + $0x168] sm:$0xff] }
  0x75   : > { %3449 = vmatmul.mubr.msk.f32.vlgmr.msra.gmra.mxu0 %vm369_vm1, %v4158_v22  ;;  %3453 = vmatprep.subr.msk.mxu0 %vm373_vm0, %v4342_v39  ;;  %v4530_v22 = vld [vmem:[#allocation4 + $0x188] sm:$0xff]  ;;  %5137 = vst [vmem:[#allocation39_spill] sm:$0xff] %v4554_v30 }
  0x76   : > { %3437 = vmatpush1.msk.msra.mxu1 %vm373_vm0, %v4254_v31  ;;  %3454 = vmatpush1.msk.msra.mxu0 %vm373_vm0, %v3445_v40  ;;  %5129 = vst [vmem:[#allocation31_spill] sm:$0xff] %v4530_v22  ;;  %v4556_v31 = vld [vmem:[#allocation4 + $0x28] sm:$0xff] }
  0x77   : > { %1542 = vmatprep.subr.mxu1 %v4263_v32  ;;  %1776 = vmatprep.subr.mxu0 %v3444_v41  ;;  %5138 = vst [vmem:[#allocation40_spill] sm:$0xff] %v4556_v31  ;;  %v4560_v32 = vld [vmem:[#allocation4 + $0x160] sm:$0xff] }
  0x78   : > { %1543 = vmatpush1.msra.mxu1 %v4272_v33  ;;  %1777 = vmatpush1.msra.mxu0 %v3443_v42  ;;  %5139 = vst [vmem:[#allocation41_spill] sm:$0xff] %v4560_v32  ;;  %v4562_v33 = vld [vmem:[#allocation4 + $0x20] sm:$0xff] }
  0x79   : > { %1544 = vmatprep.subr.mxu1 %v4281_v34  ;;  %1778 = vmatprep.subr.mxu0 %v3442_v43  ;;  %5140 = vst [vmem:[#allocation42_spill] sm:$0xff] %v4562_v33  ;;  %v4566_v34 = vld [vmem:[#allocation4 + $0x158] sm:$0xff] }
  0x7a   : > { %1545 = vmatpush1.msra.mxu1 %v4288_v35  ;;  %1779 = vmatpush1.msra.mxu0 %v3441_v44  ;;  %5141 = vst [vmem:[#allocation43_spill] sm:$0xff] %v4566_v34  ;;  %v4568_v35 = vld [vmem:[#allocation4 + $0x18] sm:$0xff] }
  0x7b   : > { %1546 = vmatprep.subr.mxu1 %v4295_v36  ;;  %1780 = vmatprep.subr.mxu0 %v3440_v45  ;;  %5142 = vst [vmem:[#allocation44_spill] sm:$0xff] %v4568_v35  ;;  %v4572_v36 = vld [vmem:[#allocation4 + $0x150] sm:$0xff] }
  0x7c   : > { %1547 = vmatpush1.msra.mxu1 %v4304_v37  ;;  %1580 = vmatprep.mubr.f32.mxu1 %v5054_v0  ;;  %5143 = vst [vmem:[#allocation45_spill] sm:$0xff] %v4572_v36  ;;  %v4574_v37 = vld [vmem:[#allocation4 + $0x10] sm:$0xff] }
  0x7d   : > { %1781 = vmatpush1.msra.mxu0 %v3439_v46  ;;  %1814 = vmatprep.mubr.f32.mxu0 %v5054_v0  ;;  %5144 = vst [vmem:[#allocation46_spill] sm:$0xff] %v4574_v37 }
  0x7e   : > { %3438 = vmatmul.mubr.msk.f32.vlgmr.msra.gmra.mxu1 %vm369_vm1, %v3435_v47  ;;  %3450 = vmatprep.subr.msk.mxu1 %vm373_vm0, %v4342_v39 }
  0x7f   : > { %3455 = vmatmul.mubr.msk.f32.vlgmr.msra.gmra.mxu0 %vm369_vm1, %v3435_v47  ;;  %3451 = vmatpush1.msk.msra.mxu1 %vm373_vm0, %v3445_v40  ;;  %v4606_v47 = vld [vmem:[#allocation4 + $0x110] sm:$0xff] }
  0x80   : > { %1703 = vmatprep.subr.mxu1 %v3444_v41  ;;  %1741 = vmatprep.mubr.f32.mxu1 %v5054_v0  ;;  %5154 = vst [vmem:[#allocation56_spill] sm:$0xff] %v4606_v47 }
  0x81   : > { %1704 = vmatpush1.msra.mxu1 %v3443_v42  ;;  %2051 = vmatprep.mubr.f32.mxu0 %v5054_v0 }
  0x82   : > { %1705 = vmatprep.subr.mxu1 %v3442_v43  ;;  %1987 = vmatprep.subr.mxu0 %v4446_v57 }
  0x83   : > { %1706 = vmatpush1.msra.mxu1 %v3441_v44  ;;  %1988 = vmatpush1.msra.mxu0 %v4450_v59 }
  0x84   : > { %1707 = vmatprep.subr.mxu1 %v3440_v45  ;;  %1989 = vmatprep.subr.mxu0 %v4456_v61 }
  0x85   : > { %1708 = vmatpush1.msra.mxu1 %v3439_v46  ;;  %1990 = vmatpush1.msra.mxu0 %v4462_v63 }
  0x86   : > { %3452 = vmatmul.mubr.msk.f32.vlgmr.msra.gmra.mxu1 %vm369_vm1, %v4335_v38  ;;  %3457 = vmatprep.subr.msk.mxu1 %vm373_vm0, %v4342_v39  ;;  %v4578_v38 = vld [vmem:[#allocation4 + $0x148] sm:$0xff] }
  0x87   : > { %3458 = vmatpush1.msk.msra.mxu1 %vm373_vm0, %v3445_v40  ;;  %1891 = vmatprep.mubr.f32.mxu1 %v5054_v0  ;;  %5145 = vst [vmem:[#allocation47_spill] sm:$0xff] %v4578_v38  ;;  %v4580_v39 = vld [vmem:[#allocation4 + $0x8] sm:$0xff]  ;;  %v4584_v40 = vld [vmem:[#allocation4 + $0x140] sm:$0xff] }
  0x88   : > { %1853 = vmatprep.subr.mxu1 %v3444_v41  ;;  %1991 = vmatprep.subr.mxu0 %v4470_v2  ;;  %5146 = vst [vmem:[#allocation48_spill] sm:$0xff] %v4580_v39  ;;  %5147 = vst [vmem:[#allocation49_spill] sm:$0xff] %v4584_v40  ;;  %v4586_v41 = vld [vmem:[#allocation4] sm:$0xff] }
  0x89   : > { %1854 = vmatpush1.msra.mxu1 %v3443_v42  ;;  %1992 = vmatpush1.msra.mxu0 %v4476_v4  ;;  %5148 = vst [vmem:[#allocation50_spill] sm:$0xff] %v4586_v41  ;;  %v4590_v42 = vld [vmem:[#allocation4 + $0x138] sm:$0xff] }
  0x8a   : > { %1855 = vmatprep.subr.mxu1 %v3442_v43  ;;  %1993 = vmatprep.subr.mxu0 %v4482_v6  ;;  %5149 = vst [vmem:[#allocation51_spill] sm:$0xff] %v4590_v42  ;;  %v4594_v43 = vld [vmem:[#allocation4 + $0x130] sm:$0xff] }
  0x8b   : > { %1856 = vmatpush1.msra.mxu1 %v3441_v44  ;;  %1994 = vmatpush1.msra.mxu0 %v4488_v8  ;;  %5150 = vst [vmem:[#allocation52_spill] sm:$0xff] %v4594_v43  ;;  %v4597_v44 = vld [vmem:[#allocation4 + $0x128] sm:$0xff] }
  0x8c   : > { %1857 = vmatprep.subr.mxu1 %v3440_v45  ;;  %1995 = vmatprep.subr.mxu0 %v4494_v10  ;;  %5151 = vst [vmem:[#allocation53_spill] sm:$0xff] %v4597_v44  ;;  %v4600_v45 = vld [vmem:[#allocation4 + $0x120] sm:$0xff] }
  0x8d   : > { %1858 = vmatpush1.msra.mxu1 %v3439_v46  ;;  %1996 = vmatpush1.msra.mxu0 %v4500_v12  ;;  %5152 = vst [vmem:[#allocation54_spill] sm:$0xff] %v4600_v45  ;;  %v4603_v46 = vld [vmem:[#allocation4 + $0x118] sm:$0xff] }
  0x8e   : > { %3459 = vmatmul.mubr.msk.f32.vlgmr.msra.gmra.mxu1 %vm369_vm1, %v3456_v48  ;;  %2058 = vmatprep.subr.mxu1 %v4422_v49  ;;  %5153 = vst [vmem:[#allocation55_spill] sm:$0xff] %v4603_v46  ;;  %v4609_v48 = vld [vmem:[#allocation4 + $0x108] sm:$0xff] }
  0x8f   : > { %2122 = vmatprep.mubr.f32.mxu1 %v5054_v0  ;;  %2059 = vmatpush1.msra.mxu1 %v4424_v50  ;;  %5155 = vst [vmem:[#allocation57_spill] sm:$0xff] %v4609_v48 }
  0x90   : > { %2060 = vmatprep.subr.mxu1 %v4426_v51  ;;  %1997 = vmatprep.subr.mxu0 %v4506_v14 }
  0x91   : > { %2061 = vmatpush1.msra.mxu1 %v4429_v52  ;;  %1998 = vmatpush1.msra.mxu0 %v4512_v16 }
  0x92   : > { %2062 = vmatprep.subr.mxu1 %v4434_v53  ;;  %1999 = vmatprep.subr.mxu0 %v4518_v18 }
  0x93   : > { %2063 = vmatpush1.msra.mxu1 %v4437_v54  ;;  %2000 = vmatpush1.msra.mxu0 %v4524_v20 }
  0x94   : > { %2064 = vmatprep.subr.mxu1 %v4440_v55  ;;  %2001 = vmatprep.subr.mxu0 %v4530_v22 }
  0x95   : > { %2065 = vmatpush1.msra.mxu1 %v4443_v56  ;;  %2002 = vmatpush1.msra.mxu0 %v4536_v24 }
  0x96   : > { %2066 = vmatprep.subr.mxu1 %v4448_v58  ;;  %2003 = vmatprep.subr.mxu0 %v4542_v26 }
  0x97   : > { %2067 = vmatpush1.msra.mxu1 %v4454_v60  ;;  %2004 = vmatpush1.msra.mxu0 %v4548_v28 }
  0x98   : > { %2068 = vmatprep.subr.mxu1 %v4458_v62  ;;  %2005 = vmatprep.subr.mxu0 %v4554_v30 }
  0x99   : > { %2069 = vmatpush1.msra.mxu1 %v4464_v1  ;;  %2006 = vmatpush1.msra.mxu0 %v4560_v32 }
  0x9a   : > { %2070 = vmatprep.subr.mxu1 %v4472_v3  ;;  %2007 = vmatprep.subr.mxu0 %v4566_v34 }
  0x9b   : > { %2071 = vmatpush1.msra.mxu1 %v4478_v5  ;;  %2008 = vmatpush1.msra.mxu0 %v4572_v36 }
  0x9c   : > { %2072 = vmatprep.subr.mxu1 %v4484_v7  ;;  %2009 = vmatprep.subr.mxu0 %v4578_v38 }
  0x9d   : > { %2073 = vmatpush1.msra.mxu1 %v4490_v9  ;;  %2010 = vmatpush1.msra.mxu0 %v4584_v40 }
  0x9e   : > { %2074 = vmatprep.subr.mxu1 %v4496_v11  ;;  %2011 = vmatprep.subr.mxu0 %v4590_v42 }
  0x9f   : > { %2075 = vmatpush1.msra.mxu1 %v4502_v13  ;;  %2012 = vmatpush1.msra.mxu0 %v4594_v43 }
  0xa0   : > { %2076 = vmatprep.subr.mxu1 %v4508_v15  ;;  %2013 = vmatprep.subr.mxu0 %v4597_v44 }
  0xa1   : > { %2077 = vmatpush1.msra.mxu1 %v4514_v17  ;;  %2014 = vmatpush1.msra.mxu0 %v4600_v45 }
  0xa2   : > { %2078 = vmatprep.subr.mxu1 %v4520_v19  ;;  %2015 = vmatprep.subr.mxu0 %v4603_v46 }
  0xa3   : > { %2079 = vmatpush1.msra.mxu1 %v4526_v21  ;;  %2016 = vmatpush1.msra.mxu0 %v4606_v47 }
  0xa4   : > { %2080 = vmatprep.subr.mxu1 %v4532_v23  ;;  %2017 = vmatprep.subr.mxu0 %v4609_v48 }
  0xa5   : > { %2081 = vmatpush1.msra.mxu1 %v4538_v25 }
  0xa6   : > { %2082 = vmatprep.subr.mxu1 %v4544_v27 }
  0xa7   : > { %2083 = vmatpush1.msra.mxu1 %v4550_v29 }
  0xa8   : > { %2084 = vmatprep.subr.mxu1 %v4556_v31 }
  0xa9   : > { %2085 = vmatpush1.msra.mxu1 %v4562_v33 }
  0xaa   : > { %2086 = vmatprep.subr.mxu1 %v4568_v35 }
  0xab   : > { %2087 = vmatpush1.msra.mxu1 %v4574_v37 }
  0xac   : > { %2088 = vmatprep.subr.mxu1 %v4580_v39 }
  0xad   : > { %2089 = vmatpush1.msra.mxu1 %v4586_v41 }
  0xae   : > { %2201 = vmatprep.subr.mxu1 %v4422_v49  ;;  %v4612_v49 = vld [vmem:[#allocation4 + $0x100] sm:$0xff] }
  0xaf   : > { %5156 = vst [vmem:[#allocation58_spill] sm:$0xff] %v4612_v49  ;;  %2018 = vmatpush1.msra.mxu0 %v4612_v49 }
  0xb0   : > { %2130 = vmatprep.subr.mxu0 %v4446_v57 }
  0xee   : > { %v446_v0 = vpop.f32.mrf.mxu1 }
  0xf0   : > { %v600_v45 = vpop.f32.mrf.mxu0  ;;  %v448_v44 = vpop.f32.mrf.mxu1 }
  0xf2   : > { %v602_v42 = vpop.f32.mrf.mxu0 }
  0xf7   : > { %v526_v43 = vpop.f32.mrf.mxu1 }
  0xf8   : > { %v527_v18 = vadd.f32 %v526_v43, %v446_v0 }
  0xf9   : > { %v528_v46 = vpop.f32.mrf.mxu1 }
  0xfa   : > { %v745_v41 = vpop.f32.mrf.mxu0  ;;  %v529_v17 = vadd.f32 %v528_v46, %v448_v44  ;;  %v5181_v44 = vld [vmem:[#allocation33_spill] sm:$0xff]  ;;  %v5182_v46 = vld [vmem:[#allocation34_spill] sm:$0xff] }
  0xfc   : > { %v747_v39 = vpop.f32.mrf.mxu0 }
 0x101   : > { %v671_v40 = vpop.f32.mrf.mxu1 }
 0x102   : > { %v672_v20 = vadd.f32 %v671_v40, %v600_v45 }
 0x103   : > { %v673_v47 = vpop.f32.mrf.mxu1 }
 0x104   : > { %v891_v38 = vpop.f32.mrf.mxu0  ;;  %v674_v16 = vadd.f32 %v673_v47, %v602_v42  ;;  %v5183_v47 = vld [vmem:[#allocation35_spill] sm:$0xff] }
 0x106   : > { %v893_v36 = vpop.f32.mrf.mxu0 }
 0x10c   : > { %v816_v37 = vpop.f32.mrf.mxu1 }
 0x10d   : > { %v1048_v34 = vpop.f32.mrf.mxu0  ;;  %v817_v0 = vadd.f32 %v816_v37, %v745_v41  ;;  %v5177_v37 = vld [vmem:[#allocation29_spill] sm:$0xff]  ;;  %v5180_v41 = vld [vmem:[#allocation32_spill] sm:$0xff] }
 0x10e   : > { %v818_v48 = vpop.f32.mrf.mxu1  ;;  %v1053_v13 = vadd.f32 %v1048_v34, %v527_v18  ;;  %v5174_v34 = vld [vmem:[#allocation26_spill] sm:$0xff] }
 0x10f   : > { %v1050_v49 = vpop.f32.mrf.mxu0  ;;  %v819_v43 = vadd.f32 %v818_v48, %v747_v39  ;;  %v5179_v39 = vld [vmem:[#allocation31_spill] sm:$0xff]  ;;  %v5184_v48 = vld [vmem:[#allocation36_spill] sm:$0xff] }
 0x110   : > { %v1054_v12 = vadd.f32 %v1050_v49, %v529_v17  ;;  %v5185_v49 = vld [vmem:[#allocation37_spill] sm:$0xff] }
 0x116   : > { %v962_v35 = vpop.f32.mrf.mxu1 }
 0x117   : > { %v1194_v57 = vpop.f32.mrf.mxu0  ;;  %v963_v2 = vadd.f32 %v962_v35, %v891_v38  ;;  %v5175_v35 = vld [vmem:[#allocation27_spill] sm:$0xff]  ;;  %v5178_v38 = vld [vmem:[#allocation30_spill] sm:$0xff] }
 0x118   : > { %v964_v33 = vpop.f32.mrf.mxu1 }
 0x119   : > { %v1196_v30 = vpop.f32.mrf.mxu0 }
 0x120   : > { %v1121_v32 = vpop.f32.mrf.mxu1 }
 0x121   : > { %v1359_v28 = vpop.f32.mrf.mxu0  ;;  %v1126_v15 = vadd.f32 %v1121_v32, %v672_v20  ;;  %v965_v20 = vadd.f32 %v964_v33, %v893_v36  ;;  %v5173_v33 = vld [vmem:[#allocation25_spill] sm:$0xff]  ;;  %v5176_v36 = vld [vmem:[#allocation28_spill] sm:$0xff] }
 0x122   : > { %v1123_v31 = vpop.f32.mrf.mxu1  ;;  %v1364_v7 = vadd.f32 %v1359_v28, %v1053_v13  ;;  %v3460_v13 = vld [vmem:[%s5046_s2] ss:$0 sm:$0xff] }
 0x123   : > { %v1361_v26 = vpop.f32.mrf.mxu0  ;;  %v1127_v11 = vadd.f32 %v1123_v31, %v674_v16  ;;  %v1199_v16 = vadd.f32 %v1194_v57, %v817_v0  ;;  %v5172_v31 = vld [vmem:[#allocation24_spill] sm:$0xff]  ;;  %v5186_v57 = vld [vmem:[#allocation38_spill] sm:$0xff]  ;;  %v5189_v0 = vld [vmem:[#allocation41_spill] sm:$0xff] }
 0x124   : > { %v1365_v6 = vadd.f32 %v1361_v26, %v1054_v12  ;;  %v1200_v12 = vadd.f32 %v1196_v30, %v819_v43  ;;  %v5190_v43 = vld [vmem:[#allocation42_spill] sm:$0xff] }
 0x12a   : > { %v1271_v29 = vpop.f32.mrf.mxu1 }
 0x12b   : > { %v1505_v24 = vpop.f32.mrf.mxu0  ;;  %v1276_v32 = vadd.f32 %v1271_v29, %v963_v2 }
 0x12c   : > { %v1273_v27 = vpop.f32.mrf.mxu1 }
 0x12d   : > { %v1507_v22 = vpop.f32.mrf.mxu0 }
 0x134   : > { %v1432_v25 = vpop.f32.mrf.mxu1 }
 0x135   : > { %v1670_v19 = vpop.f32.mrf.mxu0  ;;  %v1437_v10 = vadd.f32 %v1432_v25, %v1126_v15  ;;  %v1510_v15 = vadd.f32 %v1505_v24, %v1199_v16  ;;  %v5171_v24 = vld [vmem:[#allocation23_spill] sm:$0xff]  ;;  %v5196_v16 = vld [vmem:[#allocation48_spill] sm:$0xff] }
 0x136   : > { %v1434_v23 = vpop.f32.mrf.mxu1  ;;  %v1675_v1 = vadd.f32 %v1670_v19, %v1364_v7 }
 0x137   : > { %v1672_v9 = vpop.f32.mrf.mxu0  ;;  %v1438_v5 = vadd.f32 %v1434_v23, %v1127_v11  ;;  %v1277_v11 = vadd.f32 %v1273_v27, %v965_v20  ;;  %v5192_v20 = vld [vmem:[#allocation44_spill] sm:$0xff] }
 0x138   : > { %v1676_v40 = vadd.f32 %v1672_v9, %v1365_v6 }
 0x13e   : > { %v1582_v21 = vpop.f32.mrf.mxu1 }
 0x13f   : > { %v1816_v42 = vpop.f32.mrf.mxu0 }
 0x140   : > { %v1584_v14 = vpop.f32.mrf.mxu1  ;;  %v1821_v2 = vadd.f32 %v1816_v42, %v1510_v15  ;;  %v5191_v42 = vld [vmem:[#allocation43_spill] sm:$0xff] }
 0x141   : > { %v1818_v7 = vpop.f32.mrf.mxu0  ;;  %v2302_v15 = vld [vmem:[#allocation4 + $0x2e8] sm:$0xff] }
 0x146   : > { %v1743_v8 = vpop.f32.mrf.mxu1 }
 0x147   : > { %v1748_v4 = vadd.f32 %v1743_v8, %v1437_v10  ;;  %v1587_v8 = vadd.f32 %v1582_v21, %v1276_v32  ;;  %v5193_v32 = vld [vmem:[#allocation45_spill] sm:$0xff] }
 0x148   : > { %v1745_v3 = vpop.f32.mrf.mxu1 }
 0x149   : > { %v1749_v45 = vadd.f32 %v1745_v3, %v1438_v5  ;;  %v1901_v18 = vmax.f32 %v1675_v1, %v1748_v4  ;;  %v1511_v3 = vadd.f32 %v1507_v22, %v1200_v12  ;;  %v1588_v5 = vadd.f32 %v1584_v14, %v1277_v11  ;;  %v5197_v12 = vld [vmem:[#allocation49_spill] sm:$0xff]  ;;  %v5198_v11 = vld [vmem:[#allocation50_spill] sm:$0xff] }
 0x14a   : > { %v5157_v22 = vmov 0.0  }
 0x14b   : > { %v1902_v17 = vmax.f32 %v1676_v40, %v1749_v45  ;;  %v1822_v1 = vadd.f32 %v1818_v7, %v1511_v3  ;;  %v5187_v40 = vld [vmem:[#allocation39_spill] sm:$0xff]  ;;  %v5188_v45 = vld [vmem:[#allocation40_spill] sm:$0xff]  ;;  %v5201_v3 = vld [vmem:[#allocation53_spill] sm:$0xff] }
 0x14c   : > { %v5200_v7 = vld [vmem:[#allocation52_spill] sm:$0xff] }
 0x14d   : > { %v1903_v10 = vmax.f32 %v1901_v18, %v1902_v17  ;;  %v5194_v18 = vld [vmem:[#allocation46_spill] sm:$0xff]  ;;  %v5195_v17 = vld [vmem:[#allocation47_spill] sm:$0xff] }
 0x14e   : > { %v1893_v6 = vpop.f32.mrf.mxu1 }
 0x14f   : > { %v1910_v9 = vadd.f32 %v3460_v13, %v1903_v10  ;;  %v1898_v19 = vadd.f32 %v1893_v6, %v1587_v8  ;;  %v2303_v8 = vld [vmem:[#allocation4 + $0x2f0] sm:$0xff]  ;;  %v2301_v6 = vld [vmem:[#allocation4 + $0x2e0] sm:$0xff] }
 0x150   : > { %v1895_v23 = vpop.f32.mrf.mxu1  ;;  %v5199_v10 = vld [vmem:[#allocation51_spill] sm:$0xff] }
 0x151   : > { %v1911_v4 = vmax.f32 %v1910_v9, 0.0  ;;  %v1899_v25 = vadd.f32 %v1895_v23, %v1588_v5  ;;  %v1913_v26 = vmax.f32 %v1821_v2, %v1898_v19  ;;  %v2300_v5 = vld [vmem:[#allocation4 + $0x2d8] sm:$0xff]  ;;  %v5202_v9 = vld [vmem:[#allocation54_spill] sm:$0xff]  ;;  %v2299_v19 = vld [vmem:[#allocation4 + $0x2d0] sm:$0xff] }
 0x152   : > { %v5203_v23 = vld [vmem:[#allocation55_spill] sm:$0xff] }
 0x153   : > { %1912 = vst [vmem:[#allocation2] sm:$0x3f] %v1911_v4  ;;  %v1914_v28 = vmax.f32 %v1822_v1, %v1899_v25  ;;  %v2298_v2 = vld [vmem:[#allocation4 + $0x2c8] sm:$0xff]  ;;  %v5204_v1 = vld [vmem:[#allocation56_spill] sm:$0xff]  ;;  %v2297_v4 = vld [vmem:[#allocation4 + $0x2c0] sm:$0xff] }
 0x154   : > { %v5205_v25 = vld [vmem:[#allocation57_spill] sm:$0xff] }
 0x155   : > { %v1915_v29 = vmax.f32 %v1913_v26, %v1914_v28  ;;  %v5206_v26 = vld [vmem:[#allocation58_spill] sm:$0xff]  ;;  %v2296_v28 = vld [vmem:[#allocation4 + $0x2b8] sm:$0xff] }
 0x157   : > { %v1916_v30 = vadd.f32 %v3460_v13, %v1915_v29  ;;  %v2304_v13 = vld [vmem:[#allocation4 + $0x2f8] sm:$0xff] }
 0x159   : > { %v1917_v27 = vmax.f32 %v1916_v30, 0.0  ;;  %v2295_v30 = vld [vmem:[#allocation4 + $0x2b0] sm:$0xff] }
 0x15a   : > { %v1952_v21 = vld [vmem:[#allocation2] sm:$0xf] }
 0x15b   : > { %1919 = vst [vmem:[#allocation2 + $0x8] sm:$0x3f] %v1917_v27  ;;  %2123 = vmatmul.mubr.f32.vlgmr.msra.gmra.mxu1 %v1952_v21  ;;  %v4683_v29 = vld [vmem:[#allocation2 + $0x1] sm:$0xf]  ;;  %v2293_v21 = vld [vmem:[#allocation4 + $0x2a0] sm:$0xff] }
 0x15c   : > { %2202 = vmatpush1.msra.mxu1 %v4424_v50  ;;  %2265 = vmatprep.mubr.f32.mxu1 %v5157_v22  ;;  %v5158_v50 = vld [vmem:[#allocation10_spill] sm:$0xff] }
 0x15d   : > { %2203 = vmatprep.subr.mxu1 %v4426_v51  ;;  %v5159_v51 = vld [vmem:[#allocation11_spill] sm:$0xff] }
 0x15e   : > { %2204 = vmatpush1.msra.mxu1 %v4429_v52  ;;  %v5160_v52 = vld [vmem:[#allocation12_spill] sm:$0xff]  ;;  %v2294_v27 = vld [vmem:[#allocation4 + $0x2a8] sm:$0xff] }
 0x15f   : > { %2205 = vmatprep.subr.mxu1 %v4434_v53  ;;  %v5161_v53 = vld [vmem:[#allocation13_spill] sm:$0xff] }
 0x160   : > { %2206 = vmatpush1.msra.mxu1 %v4437_v54  ;;  %v5162_v54 = vld [vmem:[#allocation14_spill] sm:$0xff] }
 0x161   : > { %2207 = vmatprep.subr.mxu1 %v4440_v55  ;;  %v5163_v55 = vld [vmem:[#allocation15_spill] sm:$0xff] }
 0x162   : > { %2208 = vmatpush1.msra.mxu1 %v4443_v56  ;;  %v1953_v14 = vld [vmem:[#allocation2 + $0x8] sm:$0xf] }
 0x163   : > { %2209 = vmatprep.subr.mxu1 %v4448_v58  ;;  %2052 = vmatmul.mubr.f32.vlgmr.msra.gmra.mxu0 %v1953_v14  ;;  %v5164_v56 = vld [vmem:[#allocation16_spill] sm:$0xff]  ;;  %v5165_v58 = vld [vmem:[#allocation17_spill] sm:$0xff] }
 0x164   : > { %2131 = vmatpush1.msra.mxu0 %v4450_v59  ;;  %2210 = vmatpush1.msra.mxu1 %v4454_v60  ;;  %v5166_v59 = vld [vmem:[#allocation18_spill] sm:$0xff]  ;;  %v5167_v60 = vld [vmem:[#allocation19_spill] sm:$0xff] }
 0x165   : > { %2132 = vmatprep.subr.mxu0 %v4456_v61  ;;  %2211 = vmatprep.subr.mxu1 %v4458_v62  ;;  %v5168_v61 = vld [vmem:[#allocation20_spill] sm:$0xff]  ;;  %v5169_v62 = vld [vmem:[#allocation21_spill] sm:$0xff] }
 0x166   : > { %2133 = vmatpush1.msra.mxu0 %v4462_v63  ;;  %2212 = vmatpush1.msra.mxu1 %v5158_v50  ;;  %v5170_v63 = vld [vmem:[#allocation22_spill] sm:$0xff]  ;;  %v2291_v50 = vld [vmem:[#allocation4 + $0x290] sm:$0xff] }
 0x167   : > { %2134 = vmatprep.subr.mxu0 %v5159_v51  ;;  %2213 = vmatprep.subr.mxu1 %v5160_v52  ;;  %v2290_v51 = vld [vmem:[#allocation4 + $0x288] sm:$0xff]  ;;  %v2289_v52 = vld [vmem:[#allocation4 + $0x280] sm:$0xff] }
 0x168   : > { %2135 = vmatpush1.msra.mxu0 %v5161_v53  ;;  %2214 = vmatpush1.msra.mxu1 %v5162_v54  ;;  %v2288_v53 = vld [vmem:[#allocation4 + $0x278] sm:$0xff]  ;;  %v2287_v54 = vld [vmem:[#allocation4 + $0x270] sm:$0xff] }
 0x169   : > { %2136 = vmatprep.subr.mxu0 %v5163_v55  ;;  %2215 = vmatprep.subr.mxu1 %v5164_v56  ;;  %v2286_v55 = vld [vmem:[#allocation4 + $0x268] sm:$0xff]  ;;  %v2285_v56 = vld [vmem:[#allocation4 + $0x260] sm:$0xff] }
 0x16a   : > { %2137 = vmatpush1.msra.mxu0 %v5165_v58  ;;  %2216 = vmatpush1.msra.mxu1 %v5166_v59  ;;  %v2284_v58 = vld [vmem:[#allocation4 + $0x258] sm:$0xff]  ;;  %v2283_v59 = vld [vmem:[#allocation4 + $0x250] sm:$0xff] }
 0x16b   : > { %2138 = vmatprep.subr.mxu0 %v5167_v60  ;;  %2217 = vmatprep.subr.mxu1 %v5168_v61  ;;  %v2282_v60 = vld [vmem:[#allocation4 + $0x248] sm:$0xff]  ;;  %v2281_v61 = vld [vmem:[#allocation4 + $0x240] sm:$0xff] }
 0x16c   : > { %2139 = vmatpush1.msra.mxu0 %v5169_v62  ;;  %2218 = vmatpush1.msra.mxu1 %v5170_v63  ;;  %v2280_v62 = vld [vmem:[#allocation4 + $0x238] sm:$0xff]  ;;  %v2279_v63 = vld [vmem:[#allocation4 + $0x230] sm:$0xff] }
 0x16d   : > { %2140 = vmatprep.subr.mxu0 %v5171_v24  ;;  %2219 = vmatprep.subr.mxu1 %v5172_v31  ;;  %v2278_v24 = vld [vmem:[#allocation4 + $0x228] sm:$0xff]  ;;  %v2277_v31 = vld [vmem:[#allocation4 + $0x220] sm:$0xff] }
 0x16e   : > { %2141 = vmatpush1.msra.mxu0 %v5173_v33  ;;  %2220 = vmatpush1.msra.mxu1 %v5174_v34  ;;  %v2276_v33 = vld [vmem:[#allocation4 + $0x218] sm:$0xff]  ;;  %v2275_v34 = vld [vmem:[#allocation4 + $0x210] sm:$0xff] }
 0x16f   : > { %2142 = vmatprep.subr.mxu0 %v5175_v35  ;;  %2221 = vmatprep.subr.mxu1 %v5176_v36  ;;  %v2274_v35 = vld [vmem:[#allocation4 + $0x208] sm:$0xff]  ;;  %v2273_v36 = vld [vmem:[#allocation4 + $0x200] sm:$0xff] }
 0x170   : > { %2143 = vmatpush1.msra.mxu0 %v5177_v37  ;;  %2222 = vmatpush1.msra.mxu1 %v5178_v38  ;;  %v2484_v37 = vld [vmem:[#allocation4 + $0x3f8] sm:$0xff] }
 0x171   : > { %2144 = vmatprep.subr.mxu0 %v5179_v39  ;;  %2223 = vmatprep.subr.mxu1 %v5180_v41  ;;  %v4687_v38 = vld [vmem:[#allocation2 + $0x9] sm:$0xf]  ;;  %v2482_v41 = vld [vmem:[#allocation4 + $0x3e8] sm:$0xff] }
 0x172   : > { %2145 = vmatpush1.msra.mxu0 %v5181_v44  ;;  %2224 = vmatpush1.msra.mxu1 %v5182_v46  ;;  %v2483_v39 = vld [vmem:[#allocation4 + $0x3f0] sm:$0xff]  ;;  %v2481_v44 = vld [vmem:[#allocation4 + $0x3e0] sm:$0xff]  ;;  %v2480_v46 = vld [vmem:[#allocation4 + $0x3d8] sm:$0xff] }
 0x173   : > { %2146 = vmatprep.subr.mxu0 %v5183_v47  ;;  %2225 = vmatprep.subr.mxu1 %v5184_v48  ;;  %v2479_v47 = vld [vmem:[#allocation4 + $0x3d0] sm:$0xff]  ;;  %v2478_v48 = vld [vmem:[#allocation4 + $0x3c8] sm:$0xff] }
 0x174   : > { %2147 = vmatpush1.msra.mxu0 %v5185_v49  ;;  %2226 = vmatpush1.msra.mxu1 %v5186_v57  ;;  %v2477_v49 = vld [vmem:[#allocation4 + $0x3c0] sm:$0xff]  ;;  %v2476_v57 = vld [vmem:[#allocation4 + $0x3b8] sm:$0xff] }
 0x175   : > { %2148 = vmatprep.subr.mxu0 %v5187_v40  ;;  %2227 = vmatprep.subr.mxu1 %v5188_v45  ;;  %v2475_v40 = vld [vmem:[#allocation4 + $0x3b0] sm:$0xff]  ;;  %v2474_v45 = vld [vmem:[#allocation4 + $0x3a8] sm:$0xff] }
 0x176   : > { %2149 = vmatpush1.msra.mxu0 %v5189_v0  ;;  %2228 = vmatpush1.msra.mxu1 %v5190_v43  ;;  %v2473_v0 = vld [vmem:[#allocation4 + $0x3a0] sm:$0xff]  ;;  %v2472_v43 = vld [vmem:[#allocation4 + $0x398] sm:$0xff] }
 0x177   : > { %2150 = vmatprep.subr.mxu0 %v5191_v42  ;;  %2229 = vmatprep.subr.mxu1 %v5192_v20  ;;  %v2471_v42 = vld [vmem:[#allocation4 + $0x390] sm:$0xff]  ;;  %v2470_v20 = vld [vmem:[#allocation4 + $0x388] sm:$0xff] }
 0x178   : > { %2151 = vmatpush1.msra.mxu0 %v5193_v32  ;;  %2230 = vmatpush1.msra.mxu1 %v5194_v18  ;;  %v2469_v32 = vld [vmem:[#allocation4 + $0x380] sm:$0xff]  ;;  %v2468_v18 = vld [vmem:[#allocation4 + $0x378] sm:$0xff] }
 0x179   : > { %2152 = vmatprep.subr.mxu0 %v5195_v17  ;;  %2231 = vmatprep.subr.mxu1 %v5196_v16  ;;  %v2467_v17 = vld [vmem:[#allocation4 + $0x370] sm:$0xff]  ;;  %v2466_v16 = vld [vmem:[#allocation4 + $0x368] sm:$0xff] }
 0x17a   : > { %2153 = vmatpush1.msra.mxu0 %v5197_v12  ;;  %2232 = vmatpush1.msra.mxu1 %v5198_v11  ;;  %v2464_v12 = vld [vmem:[#allocation4 + $0x358] sm:$0xff]  ;;  %v2463_v11 = vld [vmem:[#allocation4 + $0x350] sm:$0xff] }
 0x17b   : > { %2154 = vmatprep.subr.mxu0 %v5199_v10  ;;  %2266 = vmatmul.mubr.f32.vlgmr.msra.gmra.mxu1 %v1953_v14  ;;  %v2292_v14 = vld [vmem:[#allocation4 + $0x298] sm:$0xff]  ;;  %v2461_v10 = vld [vmem:[#allocation4 + $0x340] sm:$0xff] }
 0x17c   : > { %2379 = vmatprep.subr.mxu1 %v2304_v13  ;;  %2155 = vmatpush1.msra.mxu0 %v5200_v7  ;;  %v2459_v7 = vld [vmem:[#allocation4 + $0x330] sm:$0xff] }
 0x17d   : > { %2380 = vmatpush1.msra.mxu1 %v2303_v8  ;;  %2156 = vmatprep.subr.mxu0 %v5201_v3  ;;  %v2457_v3 = vld [vmem:[#allocation4 + $0x320] sm:$0xff] }
 0x17e   : > { %2381 = vmatprep.subr.mxu1 %v2302_v15  ;;  %2157 = vmatpush1.msra.mxu0 %v5202_v9  ;;  %v2455_v9 = vld [vmem:[#allocation4 + $0x310] sm:$0xff] }
 0x17f   : > { %2382 = vmatpush1.msra.mxu1 %v2301_v6  ;;  %2158 = vmatprep.subr.mxu0 %v5203_v23  ;;  %v2453_v23 = vld [vmem:[#allocation4 + $0x300] sm:$0xff] }
 0x180   : > { %2383 = vmatprep.subr.mxu1 %v2300_v5  ;;  %2159 = vmatpush1.msra.mxu0 %v5204_v1  ;;  %v4693_v1 = vld [vmem:[#allocation2 + $0x2] sm:$0xf] }
 0x181   : > { %2384 = vmatpush1.msra.mxu1 %v2299_v19  ;;  %2160 = vmatprep.subr.mxu0 %v5205_v25  ;;  %v2662_v25 = vld [vmem:[#allocation4 + $0x4e8] sm:$0xff] }
 0x182   : > { %2385 = vmatprep.subr.mxu1 %v2298_v2  ;;  %2161 = vmatpush1.msra.mxu0 %v5206_v26  ;;  %v2661_v26 = vld [vmem:[#allocation4 + $0x4e0] sm:$0xff] }
 0x183   : > { %2194 = vmatprep.mubr.f32.mxu0 %v5157_v22  ;;  %2386 = vmatpush1.msra.mxu1 %v2297_v4 }
 0x184   : > { %2195 = vmatmul.mubr.f32.vlgmr.msra.gmra.mxu0 %v4683_v29  ;;  %2305 = vmatprep.subr.mxu0 %v2304_v13  ;;  %v2465_v13 = vld [vmem:[#allocation4 + $0x360] sm:$0xff] }
 0x185   : > { %2387 = vmatprep.subr.mxu1 %v2296_v28  ;;  %2306 = vmatpush1.msra.mxu0 %v2303_v8  ;;  %v2462_v8 = vld [vmem:[#allocation4 + $0x348] sm:$0xff] }
 0x186   : > { %2388 = vmatpush1.msra.mxu1 %v2295_v30  ;;  %2307 = vmatprep.subr.mxu0 %v2302_v15  ;;  %v2460_v15 = vld [vmem:[#allocation4 + $0x338] sm:$0xff] }
 0x187   : > { %2389 = vmatprep.subr.mxu1 %v2294_v27  ;;  %2308 = vmatpush1.msra.mxu0 %v2301_v6  ;;  %v2458_v6 = vld [vmem:[#allocation4 + $0x328] sm:$0xff] }
 0x188   : > { %2390 = vmatpush1.msra.mxu1 %v2293_v21  ;;  %2309 = vmatprep.subr.mxu0 %v2300_v5  ;;  %v2456_v5 = vld [vmem:[#allocation4 + $0x318] sm:$0xff] }
 0x189   : > { %2391 = vmatprep.subr.mxu1 %v2292_v14  ;;  %2310 = vmatpush1.msra.mxu0 %v2299_v19  ;;  %v2454_v19 = vld [vmem:[#allocation4 + $0x308] sm:$0xff] }
 0x18a   : > { %2392 = vmatpush1.msra.mxu1 %v2291_v50  ;;  %2311 = vmatprep.subr.mxu0 %v2298_v2  ;;  %v2664_v2 = vld [vmem:[#allocation4 + $0x4f8] sm:$0xff] }
 0x18b   : > { %2393 = vmatprep.subr.mxu1 %v2290_v51  ;;  %2312 = vmatpush1.msra.mxu0 %v2297_v4  ;;  %v2663_v4 = vld [vmem:[#allocation4 + $0x4f0] sm:$0xff] }
 0x18c   : > { %2394 = vmatpush1.msra.mxu1 %v2289_v52  ;;  %2313 = vmatprep.subr.mxu0 %v2296_v28  ;;  %v2660_v28 = vld [vmem:[#allocation4 + $0x4d8] sm:$0xff] }
 0x18d   : > { %2395 = vmatprep.subr.mxu1 %v2288_v53  ;;  %2314 = vmatpush1.msra.mxu0 %v2295_v30  ;;  %v2658_v30 = vld [vmem:[#allocation4 + $0x4c8] sm:$0xff] }
 0x18e   : > { %2396 = vmatpush1.msra.mxu1 %v2287_v54  ;;  %2315 = vmatprep.subr.mxu0 %v2294_v27  ;;  %v2657_v27 = vld [vmem:[#allocation4 + $0x4c0] sm:$0xff] }
 0x18f   : > { %2397 = vmatprep.subr.mxu1 %v2286_v55  ;;  %2316 = vmatpush1.msra.mxu0 %v2293_v21  ;;  %v2656_v21 = vld [vmem:[#allocation4 + $0x4b8] sm:$0xff] }
 0x190   : > { %2398 = vmatpush1.msra.mxu1 %v2285_v56  ;;  %2317 = vmatprep.subr.mxu0 %v2292_v14  ;;  %v2655_v14 = vld [vmem:[#allocation4 + $0x4b0] sm:$0xff] }
 0x191   : > { %2399 = vmatprep.subr.mxu1 %v2284_v58  ;;  %2318 = vmatpush1.msra.mxu0 %v2291_v50  ;;  %v2654_v50 = vld [vmem:[#allocation4 + $0x4a8] sm:$0xff] }
 0x192   : > { %2400 = vmatpush1.msra.mxu1 %v2283_v59  ;;  %2319 = vmatprep.subr.mxu0 %v2290_v51  ;;  %v2653_v51 = vld [vmem:[#allocation4 + $0x4a0] sm:$0xff] }
 0x193   : > { %2401 = vmatprep.subr.mxu1 %v2282_v60  ;;  %2320 = vmatpush1.msra.mxu0 %v2289_v52  ;;  %v2652_v52 = vld [vmem:[#allocation4 + $0x498] sm:$0xff] }
 0x194   : > { %2402 = vmatpush1.msra.mxu1 %v2281_v61  ;;  %2321 = vmatprep.subr.mxu0 %v2288_v53  ;;  %v2651_v53 = vld [vmem:[#allocation4 + $0x490] sm:$0xff] }
 0x195   : > { %2403 = vmatprep.subr.mxu1 %v2280_v62  ;;  %2322 = vmatpush1.msra.mxu0 %v2287_v54  ;;  %v2650_v54 = vld [vmem:[#allocation4 + $0x488] sm:$0xff] }
 0x196   : > { %2404 = vmatpush1.msra.mxu1 %v2279_v63  ;;  %2323 = vmatprep.subr.mxu0 %v2286_v55  ;;  %v2649_v55 = vld [vmem:[#allocation4 + $0x480] sm:$0xff] }
 0x197   : > { %2405 = vmatprep.subr.mxu1 %v2278_v24  ;;  %2324 = vmatpush1.msra.mxu0 %v2285_v56  ;;  %v2648_v56 = vld [vmem:[#allocation4 + $0x478] sm:$0xff] }
 0x198   : > { %2406 = vmatpush1.msra.mxu1 %v2277_v31  ;;  %2325 = vmatprep.subr.mxu0 %v2284_v58  ;;  %v2647_v58 = vld [vmem:[#allocation4 + $0x470] sm:$0xff] }
 0x199   : > { %2407 = vmatprep.subr.mxu1 %v2276_v33  ;;  %2326 = vmatpush1.msra.mxu0 %v2283_v59  ;;  %v2646_v59 = vld [vmem:[#allocation4 + $0x468] sm:$0xff] }
 0x19a   : > { %2408 = vmatpush1.msra.mxu1 %v2275_v34  ;;  %2327 = vmatprep.subr.mxu0 %v2282_v60  ;;  %v2645_v60 = vld [vmem:[#allocation4 + $0x460] sm:$0xff] }
 0x19b   : > { %2409 = vmatprep.subr.mxu1 %v2274_v35  ;;  %2328 = vmatpush1.msra.mxu0 %v2281_v61  ;;  %v2644_v61 = vld [vmem:[#allocation4 + $0x458] sm:$0xff] }
 0x19c   : > { %2410 = vmatpush1.msra.mxu1 %v2273_v36  ;;  %2443 = vmatprep.mubr.f32.mxu1 %v5157_v22 }
 0x19d   : > { %2329 = vmatprep.subr.mxu0 %v2280_v62  ;;  %2444 = vmatmul.mubr.f32.vlgmr.msra.gmra.mxu1 %v4687_v38  ;;  %v2643_v62 = vld [vmem:[#allocation4 + $0x450] sm:$0xff] }
 0x19e   : > { %2559 = vmatprep.subr.mxu1 %v2484_v37  ;;  %2330 = vmatpush1.msra.mxu0 %v2279_v63  ;;  %v2642_v63 = vld [vmem:[#allocation4 + $0x448] sm:$0xff] }
 0x19f   : > { %2560 = vmatpush1.msra.mxu1 %v2483_v39  ;;  %2331 = vmatprep.subr.mxu0 %v2278_v24  ;;  %v2641_v24 = vld [vmem:[#allocation4 + $0x440] sm:$0xff] }
 0x1a0   : > { %2561 = vmatprep.subr.mxu1 %v2482_v41  ;;  %2332 = vmatpush1.msra.mxu0 %v2277_v31  ;;  %v2640_v31 = vld [vmem:[#allocation4 + $0x438] sm:$0xff] }
 0x1a1   : > { %2562 = vmatpush1.msra.mxu1 %v2481_v44  ;;  %2333 = vmatprep.subr.mxu0 %v2276_v33  ;;  %v2639_v33 = vld [vmem:[#allocation4 + $0x430] sm:$0xff] }
 0x1a2   : > { %2563 = vmatprep.subr.mxu1 %v2480_v46  ;;  %2334 = vmatpush1.msra.mxu0 %v2275_v34  ;;  %v2638_v34 = vld [vmem:[#allocation4 + $0x428] sm:$0xff] }
 0x1a3   : > { %2564 = vmatpush1.msra.mxu1 %v2479_v47  ;;  %2335 = vmatprep.subr.mxu0 %v2274_v35  ;;  %v2637_v35 = vld [vmem:[#allocation4 + $0x420] sm:$0xff] }
 0x1a4   : > { %2565 = vmatprep.subr.mxu1 %v2478_v48  ;;  %2336 = vmatpush1.msra.mxu0 %v2273_v36  ;;  %v2636_v36 = vld [vmem:[#allocation4 + $0x418] sm:$0xff] }
 0x1a5   : > { %2369 = vmatprep.mubr.f32.mxu0 %v5157_v22  ;;  %2566 = vmatpush1.msra.mxu1 %v2477_v49 }
 0x1a6   : > { %2370 = vmatmul.mubr.f32.vlgmr.msra.gmra.mxu0 %v4683_v29  ;;  %2485 = vmatprep.subr.mxu0 %v2484_v37  ;;  %v2659_v29 = vld [vmem:[#allocation4 + $0x4d0] sm:$0xff] }
 0x1a7   : > { %2567 = vmatprep.subr.mxu1 %v2476_v57  ;;  %2486 = vmatpush1.msra.mxu0 %v2483_v39  ;;  %v2635_v37 = vld [vmem:[#allocation4 + $0x410] sm:$0xff]  ;;  %v2633_v39 = vld [vmem:[#allocation4 + $0x400] sm:$0xff] }
 0x1a8   : > { %2568 = vmatpush1.msra.mxu1 %v2475_v40  ;;  %2487 = vmatprep.subr.mxu0 %v2482_v41  ;;  %v2738_v41 = vld [vmem:[#allocation2 + $0xa] sm:$0xf] }
 0x1a9   : > { %2569 = vmatprep.subr.mxu1 %v2474_v45  ;;  %2488 = vmatpush1.msra.mxu0 %v2481_v44  ;;  %v3477_v44 = vld [vmem:[%s5049_s5 + $0xf8] sm:$0xff] }
 0x1aa   : > { %2570 = vmatpush1.msra.mxu1 %v2473_v0  ;;  %2489 = vmatprep.subr.mxu0 %v2480_v46  ;;  %v2841_v46 = vld [vmem:[%s5049_s5 + $0x78] sm:$0xff] }
 0x1ab   : > { %2571 = vmatprep.subr.mxu1 %v2472_v43  ;;  %2490 = vmatpush1.msra.mxu0 %v2479_v47  ;;  %v3476_v47 = vld [vmem:[%s5049_s5 + $0xf0] sm:$0xff] }
 0x1ac   : > { %2572 = vmatpush1.msra.mxu1 %v2471_v42  ;;  %2491 = vmatprep.subr.mxu0 %v2478_v48  ;;  %v2840_v48 = vld [vmem:[%s5049_s5 + $0x70] sm:$0xff] }
 0x1ad   : > { %2573 = vmatprep.subr.mxu1 %v2470_v20  ;;  %2492 = vmatpush1.msra.mxu0 %v2477_v49  ;;  %v3475_v49 = vld [vmem:[%s5049_s5 + $0xe8] sm:$0xff] }
 0x1ae   : > { %2574 = vmatpush1.msra.mxu1 %v2469_v32  ;;  %2493 = vmatprep.subr.mxu0 %v2476_v57  ;;  %v2839_v57 = vld [vmem:[%s5049_s5 + $0x68] sm:$0xff] }
 0x1af   : > { %2575 = vmatprep.subr.mxu1 %v2468_v18  ;;  %2494 = vmatpush1.msra.mxu0 %v2475_v40  ;;  %v3474_v40 = vld [vmem:[%s5049_s5 + $0xe0] sm:$0xff] }
 0x1b0   : > { %2576 = vmatpush1.msra.mxu1 %v2467_v17  ;;  %2495 = vmatprep.subr.mxu0 %v2474_v45  ;;  %v2838_v45 = vld [vmem:[%s5049_s5 + $0x60] sm:$0xff] }
 0x1b1   : > { %2577 = vmatprep.subr.mxu1 %v2466_v16  ;;  %2496 = vmatpush1.msra.mxu0 %v2473_v0  ;;  %v3473_v0 = vld [vmem:[%s5049_s5 + $0xd8] sm:$0xff] }
 0x1b2   : > { %2578 = vmatpush1.msra.mxu1 %v2465_v13  ;;  %2497 = vmatprep.subr.mxu0 %v2472_v43  ;;  %v2837_v43 = vld [vmem:[%s5049_s5 + $0x58] sm:$0xff] }
 0x1b3   : > { %2579 = vmatprep.subr.mxu1 %v2464_v12  ;;  %2498 = vmatpush1.msra.mxu0 %v2471_v42  ;;  %v3472_v42 = vld [vmem:[%s5049_s5 + $0xd0] sm:$0xff] }
 0x1b4   : > { %2580 = vmatpush1.msra.mxu1 %v2463_v11  ;;  %2499 = vmatprep.subr.mxu0 %v2470_v20  ;;  %v2836_v20 = vld [vmem:[%s5049_s5 + $0x50] sm:$0xff] }
 0x1b5   : > { %2581 = vmatprep.subr.mxu1 %v2462_v8  ;;  %2500 = vmatpush1.msra.mxu0 %v2469_v32  ;;  %v3471_v32 = vld [vmem:[%s5049_s5 + $0xc8] sm:$0xff] }
 0x1b6   : > { %2582 = vmatpush1.msra.mxu1 %v2461_v10  ;;  %2501 = vmatprep.subr.mxu0 %v2468_v18  ;;  %v2835_v18 = vld [vmem:[%s5049_s5 + $0x48] sm:$0xff] }
 0x1b7   : > { %2583 = vmatprep.subr.mxu1 %v2460_v15  ;;  %2502 = vmatpush1.msra.mxu0 %v2467_v17  ;;  %v3470_v17 = vld [vmem:[%s5049_s5 + $0xc0] sm:$0xff] }
 0x1b8   : > { %2584 = vmatpush1.msra.mxu1 %v2459_v7  ;;  %2503 = vmatprep.subr.mxu0 %v2466_v16  ;;  %v2834_v16 = vld [vmem:[%s5049_s5 + $0x40] sm:$0xff] }
 0x1b9   : > { %2585 = vmatprep.subr.mxu1 %v2458_v6  ;;  %2504 = vmatpush1.msra.mxu0 %v2465_v13  ;;  %v3469_v13 = vld [vmem:[%s5049_s5 + $0xb8] sm:$0xff] }
 0x1ba   : > { %2586 = vmatpush1.msra.mxu1 %v2457_v3  ;;  %2505 = vmatprep.subr.mxu0 %v2464_v12  ;;  %v2833_v12 = vld [vmem:[%s5049_s5 + $0x38] sm:$0xff] }
 0x1bb   : > { %2587 = vmatprep.subr.mxu1 %v2456_v5  ;;  %2506 = vmatpush1.msra.mxu0 %v2463_v11  ;;  %v3468_v11 = vld [vmem:[%s5049_s5 + $0xb0] sm:$0xff] }
 0x1bc   : > { %2588 = vmatpush1.msra.mxu1 %v2455_v9  ;;  %2507 = vmatprep.subr.mxu0 %v2462_v8  ;;  %v2832_v8 = vld [vmem:[%s5049_s5 + $0x30] sm:$0xff] }
 0x1bd   : > { %2589 = vmatprep.subr.mxu1 %v2454_v19  ;;  %2508 = vmatpush1.msra.mxu0 %v2461_v10  ;;  %v3467_v10 = vld [vmem:[%s5049_s5 + $0xa8] sm:$0xff] }
 0x1be   : > { %2590 = vmatpush1.msra.mxu1 %v2453_v23  ;;  %2623 = vmatprep.mubr.f32.mxu1 %v5157_v22 }
 0x1bf   : > { %2509 = vmatprep.subr.mxu0 %v2460_v15  ;;  %2624 = vmatmul.mubr.f32.vlgmr.msra.gmra.mxu1 %v4693_v1  ;;  %v2831_v15 = vld [vmem:[%s5049_s5 + $0x28] sm:$0xff] }
 0x1c0   : > { %2739 = vmatprep.subr.mxu1 %v2664_v2  ;;  %2510 = vmatpush1.msra.mxu0 %v2459_v7  ;;  %v3466_v7 = vld [vmem:[%s5049_s5 + $0xa0] sm:$0xff] }
 0x1c1   : > { %2740 = vmatpush1.msra.mxu1 %v2663_v4  ;;  %2511 = vmatprep.subr.mxu0 %v2458_v6  ;;  %v2830_v6 = vld [vmem:[%s5049_s5 + $0x20] sm:$0xff] }
 0x1c2   : > { %2741 = vmatprep.subr.mxu1 %v2662_v25  ;;  %2512 = vmatpush1.msra.mxu0 %v2457_v3  ;;  %v3465_v3 = vld [vmem:[%s5049_s5 + $0x98] sm:$0xff] }
 0x1c3   : > { %2742 = vmatpush1.msra.mxu1 %v2661_v26  ;;  %2513 = vmatprep.subr.mxu0 %v2456_v5  ;;  %v2829_v5 = vld [vmem:[%s5049_s5 + $0x18] sm:$0xff] }
 0x1c4   : > { %2743 = vmatprep.subr.mxu1 %v2660_v28  ;;  %2514 = vmatpush1.msra.mxu0 %v2455_v9  ;;  %v3464_v9 = vld [vmem:[%s5049_s5 + $0x90] sm:$0xff] }
 0x1c5   : > { %2744 = vmatpush1.msra.mxu1 %v2659_v29  ;;  %2515 = vmatprep.subr.mxu0 %v2454_v19  ;;  %v2828_v19 = vld [vmem:[%s5049_s5 + $0x10] sm:$0xff] }
 0x1c6   : > { %2745 = vmatprep.subr.mxu1 %v2658_v30  ;;  %2516 = vmatpush1.msra.mxu0 %v2453_v23  ;;  %v3463_v23 = vld [vmem:[%s5049_s5 + $0x88] sm:$0xff] }
 0x1c7   : > { %2549 = vmatprep.mubr.f32.mxu0 %v5157_v22  ;;  %2746 = vmatpush1.msra.mxu1 %v2657_v27 }
 0x1c8   : > { %2550 = vmatmul.mubr.f32.vlgmr.msra.gmra.mxu0 %v4687_v38  ;;  %2665 = vmatprep.subr.mxu0 %v2664_v2  ;;  %v2634_v38 = vld [vmem:[#allocation4 + $0x408] sm:$0xff]  ;;  %v2827_v2 = vld [vmem:[%s5049_s5 + $0x8] sm:$0xff] }
 0x1c9   : > { %2747 = vmatprep.subr.mxu1 %v2656_v21  ;;  %2666 = vmatpush1.msra.mxu0 %v2663_v4  ;;  %v2826_v4 = vld [vmem:[%s5049_s5] sm:$0xff] }
 0x1ca   : > { %2748 = vmatpush1.msra.mxu1 %v2655_v14  ;;  %2667 = vmatprep.subr.mxu0 %v2662_v25 }
 0x1cb   : > { %2749 = vmatprep.subr.mxu1 %v2654_v50  ;;  %2668 = vmatpush1.msra.mxu0 %v2661_v26 }
 0x1cc   : > { %2750 = vmatpush1.msra.mxu1 %v2653_v51  ;;  %2669 = vmatprep.subr.mxu0 %v2660_v28 }
 0x1cd   : > { %2751 = vmatprep.subr.mxu1 %v2652_v52  ;;  %2670 = vmatpush1.msra.mxu0 %v2659_v29 }
 0x1ce   : > { %2752 = vmatpush1.msra.mxu1 %v2651_v53  ;;  %2671 = vmatprep.subr.mxu0 %v2658_v30 }
 0x1cf   : > { %2753 = vmatprep.subr.mxu1 %v2650_v54  ;;  %2672 = vmatpush1.msra.mxu0 %v2657_v27 }
 0x1d0   : > { %2754 = vmatpush1.msra.mxu1 %v2649_v55  ;;  %2673 = vmatprep.subr.mxu0 %v2656_v21 }
 0x1d1   : > { %2755 = vmatprep.subr.mxu1 %v2648_v56  ;;  %2674 = vmatpush1.msra.mxu0 %v2655_v14 }
 0x1d2   : > { %2756 = vmatpush1.msra.mxu1 %v2647_v58  ;;  %2675 = vmatprep.subr.mxu0 %v2654_v50 }
 0x1d3   : > { %2757 = vmatprep.subr.mxu1 %v2646_v59  ;;  %2676 = vmatpush1.msra.mxu0 %v2653_v51 }
 0x1d4   : > { %2758 = vmatpush1.msra.mxu1 %v2645_v60  ;;  %2677 = vmatprep.subr.mxu0 %v2652_v52 }
 0x1d5   : > { %2759 = vmatprep.subr.mxu1 %v2644_v61  ;;  %2678 = vmatpush1.msra.mxu0 %v2651_v53 }
 0x1d6   : > { %2760 = vmatpush1.msra.mxu1 %v2643_v62  ;;  %2679 = vmatprep.subr.mxu0 %v2650_v54 }
 0x1d7   : > { %2761 = vmatprep.subr.mxu1 %v2642_v63  ;;  %2680 = vmatpush1.msra.mxu0 %v2649_v55 }
 0x1d8   : > { %2762 = vmatpush1.msra.mxu1 %v2641_v24  ;;  %2681 = vmatprep.subr.mxu0 %v2648_v56 }
 0x1d9   : > { %2763 = vmatprep.subr.mxu1 %v2640_v31  ;;  %2682 = vmatpush1.msra.mxu0 %v2647_v58 }
 0x1da   : > { %2764 = vmatpush1.msra.mxu1 %v2639_v33  ;;  %2683 = vmatprep.subr.mxu0 %v2646_v59 }
 0x1db   : > { %2765 = vmatprep.subr.mxu1 %v2638_v34  ;;  %2684 = vmatpush1.msra.mxu0 %v2645_v60 }
 0x1dc   : > { %2766 = vmatpush1.msra.mxu1 %v2637_v35  ;;  %2685 = vmatprep.subr.mxu0 %v2644_v61 }
 0x1dd   : > { %2767 = vmatprep.subr.mxu1 %v2636_v36  ;;  %2686 = vmatpush1.msra.mxu0 %v2643_v62 }
 0x1de   : > { %2768 = vmatpush1.msra.mxu1 %v2635_v37  ;;  %2687 = vmatprep.subr.mxu0 %v2642_v63 }
 0x1df   : > { %2769 = vmatprep.subr.mxu1 %v2634_v38  ;;  %2688 = vmatpush1.msra.mxu0 %v2641_v24 }
 0x1e0   : > { %2770 = vmatpush1.msra.mxu1 %v2633_v39  ;;  %2803 = vmatprep.mubr.f32.mxu1 %v5157_v22 }
 0x1e1   : > { %2689 = vmatprep.subr.mxu0 %v2640_v31  ;;  %2804 = vmatmul.mubr.f32.vlgmr.msra.gmra.mxu1 %v2738_v41 }
 0x1e2   : > { %2690 = vmatpush1.msra.mxu0 %v2639_v33  ;;  %2729 = vmatprep.mubr.f32.mxu0 %v5157_v22 }
 0x1e3   : > { %2691 = vmatprep.subr.mxu0 %v2638_v34  ;;  %3627 = vmatprep.subr.mxu1 %v5157_v22 }
 0x1e4   : > { %2692 = vmatpush1.msra.mxu0 %v2637_v35  ;;  %3628 = vmatpush3.msra.mxu1 %v2841_v46 }
 0x1e5   : > { %2693 = vmatprep.subr.mxu0 %v2636_v36  ;;  %3629 = vmatprep.subr.mxu1 %v5157_v22 }
 0x1e6   : > { %2694 = vmatpush1.msra.mxu0 %v2635_v37  ;;  %3630 = vmatpush3.msra.mxu1 %v2840_v48 }
 0x1e7   : > { %2695 = vmatprep.subr.mxu0 %v2634_v38  ;;  %3631 = vmatprep.subr.mxu1 %v5157_v22 }
 0x1e8   : > { %2696 = vmatpush1.msra.mxu0 %v2633_v39  ;;  %3632 = vmatpush3.msra.mxu1 %v2839_v57 }
 0x1e9   : > { %2730 = vmatmul.mubr.f32.vlgmr.msra.gmra.mxu0 %v4693_v1  ;;  %3592 = vmatprep.subr.mxu0 %v5157_v22  ;;  %v3462_v1 = vld [vmem:[%s5049_s5 + $0x80] sm:$0xff] }
 0x1ea   : > { %3593 = vmatpush3.msra.mxu0 %v3477_v44  ;;  %3633 = vmatprep.subr.mxu1 %v5157_v22 }
 0x1eb   : > { %3594 = vmatprep.subr.mxu0 %v5157_v22  ;;  %3634 = vmatpush3.msra.mxu1 %v2838_v45  ;;  %v3461_v45 = vld [vmem:[%s5048_s4] ss:$0 sm:$0xff] }
 0x1ec   : > { %3595 = vmatpush3.msra.mxu0 %v3476_v47  ;;  %3635 = vmatprep.subr.mxu1 %v5157_v22 }
 0x1ed   : > { %3596 = vmatprep.subr.mxu0 %v5157_v22  ;;  %3636 = vmatpush3.msra.mxu1 %v2837_v43 }
 0x1ee   : > { %3597 = vmatpush3.msra.mxu0 %v3475_v49  ;;  %3637 = vmatprep.subr.mxu1 %v5157_v22 }
 0x1ef   : > { %3598 = vmatprep.subr.mxu0 %v5157_v22  ;;  %3638 = vmatpush3.msra.mxu1 %v2836_v20  ;;  %v3493_v20 = vld [vmem:[%s5049_s5 + $0x178] sm:$0xff] }
 0x1f0   : > { %3599 = vmatpush3.msra.mxu0 %v3474_v40  ;;  %3639 = vmatprep.subr.mxu1 %v5157_v22 }
 0x1f1   : > { %3600 = vmatprep.subr.mxu0 %v5157_v22  ;;  %3640 = vmatpush3.msra.mxu1 %v2835_v18 }
 0x1f2   : > { %3601 = vmatpush3.msra.mxu0 %v3473_v0  ;;  %3641 = vmatprep.subr.mxu1 %v5157_v22 }
 0x1f3   : > { %3602 = vmatprep.subr.mxu0 %v5157_v22  ;;  %3642 = vmatpush3.msra.mxu1 %v2834_v16  ;;  %v3492_v16 = vld [vmem:[%s5049_s5 + $0x170] sm:$0xff] }
 0x1f4   : > { %3603 = vmatpush3.msra.mxu0 %v3472_v42  ;;  %3643 = vmatprep.subr.mxu1 %v5157_v22 }
 0x1f5   : > { %3604 = vmatprep.subr.mxu0 %v5157_v22  ;;  %3644 = vmatpush3.msra.mxu1 %v2833_v12  ;;  %v3491_v12 = vld [vmem:[%s5049_s5 + $0x168] sm:$0xff] }
 0x1f6   : > { %3605 = vmatpush3.msra.mxu0 %v3471_v32  ;;  %3645 = vmatprep.subr.mxu1 %v5157_v22  ;;  %v3509_v32 = vld [vmem:[%s5049_s5 + $0x1f8] sm:$0xff] }
 0x1f7   : > { %3606 = vmatprep.subr.mxu0 %v5157_v22  ;;  %3646 = vmatpush3.msra.mxu1 %v2832_v8  ;;  %v3490_v8 = vld [vmem:[%s5049_s5 + $0x160] sm:$0xff] }
 0x1f8   : > { %3607 = vmatpush3.msra.mxu0 %v3470_v17  ;;  %3647 = vmatprep.subr.mxu1 %v5157_v22 }
 0x1f9   : > { %3608 = vmatprep.subr.mxu0 %v5157_v22  ;;  %3648 = vmatpush3.msra.mxu1 %v2831_v15  ;;  %v3489_v15 = vld [vmem:[%s5049_s5 + $0x158] sm:$0xff] }
 0x1fa   : > { %3609 = vmatpush3.msra.mxu0 %v3469_v13  ;;  %3649 = vmatprep.subr.mxu1 %v5157_v22  ;;  %v3508_v13 = vld [vmem:[%s5049_s5 + $0x1f0] sm:$0xff] }
 0x1fb   : > { %3610 = vmatprep.subr.mxu0 %v5157_v22  ;;  %3650 = vmatpush3.msra.mxu1 %v2830_v6  ;;  %v3488_v6 = vld [vmem:[%s5049_s5 + $0x150] sm:$0xff] }
 0x1fc   : > { %3611 = vmatpush3.msra.mxu0 %v3468_v11  ;;  %3651 = vmatprep.subr.mxu1 %v5157_v22  ;;  %v3507_v11 = vld [vmem:[%s5049_s5 + $0x1e8] sm:$0xff] }
 0x1fd   : > { %3612 = vmatprep.subr.mxu0 %v5157_v22  ;;  %3652 = vmatpush3.msra.mxu1 %v2829_v5  ;;  %v3487_v5 = vld [vmem:[%s5049_s5 + $0x148] sm:$0xff] }
 0x1fe   : > { %3613 = vmatpush3.msra.mxu0 %v3467_v10  ;;  %3653 = vmatprep.subr.mxu1 %v5157_v22  ;;  %v3506_v10 = vld [vmem:[%s5049_s5 + $0x1e0] sm:$0xff] }
 0x1ff   : > { %3614 = vmatprep.subr.mxu0 %v5157_v22  ;;  %3654 = vmatpush3.msra.mxu1 %v2828_v19  ;;  %v3486_v19 = vld [vmem:[%s5049_s5 + $0x140] sm:$0xff] }
 0x200   : > { %3615 = vmatpush3.msra.mxu0 %v3466_v7  ;;  %3655 = vmatprep.subr.mxu1 %v5157_v22  ;;  %v3505_v7 = vld [vmem:[%s5049_s5 + $0x1d8] sm:$0xff] }
 0x201   : > { %3616 = vmatprep.subr.mxu0 %v5157_v22  ;;  %3656 = vmatpush3.msra.mxu1 %v2827_v2  ;;  %v3485_v2 = vld [vmem:[%s5049_s5 + $0x138] sm:$0xff] }
 0x202   : > { %3617 = vmatpush3.msra.mxu0 %v3465_v3  ;;  %3657 = vmatprep.subr.mxu1 %v5157_v22  ;;  %v3504_v3 = vld [vmem:[%s5049_s5 + $0x1d0] sm:$0xff] }
 0x203   : > { %3618 = vmatprep.subr.mxu0 %v5157_v22  ;;  %3658 = vmatpush3.msra.mxu1 %v2826_v4  ;;  %v3484_v4 = vld [vmem:[%s5049_s5 + $0x130] sm:$0xff] }
 0x204   : > { %3619 = vmatpush3.msra.mxu0 %v3464_v9  ;;  %3624 = vmatprep.mubr.msk.f32.mxu0 %vm3903_vm2, %v5157_v22  ;;  %v3503_v9 = vld [vmem:[%s5049_s5 + $0x1c8] sm:$0xff] }
 0x205   : > { %3620 = vmatprep.subr.mxu0 %v5157_v22  ;;  %3659 = vmatprep.mubr.msk.f32.mxu1 %vm3903_vm2, %v5157_v22 }
 0x206   : > { %3621 = vmatpush3.msra.mxu0 %v3463_v23  ;;  %3697 = vmatprep.subr.mxu1 %v5157_v22  ;;  %v3502_v23 = vld [vmem:[%s5049_s5 + $0x1c0] sm:$0xff] }
 0x207   : > { %3622 = vmatprep.subr.mxu0 %v5157_v22 }
 0x208   : > { %3623 = vmatpush3.msra.mxu0 %v3462_v1  ;;  %v3501_v1 = vld [vmem:[%s5049_s5 + $0x1b8] sm:$0xff] }
 0x209   : > { %3662 = vmatprep.subr.mxu0 %v5157_v22 }
 0x21b   : > { %v2124_v25 = vpop.f32.mrf.mxu1 }
 0x21d   : > { %v2126_v26 = vpop.f32.mrf.mxu1 }
 0x223   : > { %v2053_v28 = vpop.f32.mrf.mxu0 }
 0x224   : > { %v2125_v58 = vadd.f32 %v2124_v25, %v2053_v28  ;;  %v3500_v25 = vld [vmem:[%s5049_s5 + $0x1b0] sm:$0xff]  ;;  %v3499_v28 = vld [vmem:[%s5049_s5 + $0x1a8] sm:$0xff] }
 0x225   : > { %v2055_v30 = vpop.f32.mrf.mxu0 }
 0x226   : > { %v2127_v60 = vadd.f32 %v2126_v26, %v2055_v30  ;;  %v3483_v26 = vld [vmem:[%s5049_s5 + $0x128] sm:$0xff]  ;;  %v3498_v30 = vld [vmem:[%s5049_s5 + $0x1a0] sm:$0xff] }
 0x23b   : > { %v2267_v29 = vpop.f32.mrf.mxu1 }
 0x23d   : > { %v2269_v27 = vpop.f32.mrf.mxu1 }
 0x244   : > { %v2196_v21 = vpop.f32.mrf.mxu0 }
 0x245   : > { %v2268_v61 = vadd.f32 %v2267_v29, %v2196_v21  ;;  %v3482_v29 = vld [vmem:[%s5049_s5 + $0x120] sm:$0xff]  ;;  %v3497_v21 = vld [vmem:[%s5049_s5 + $0x198] sm:$0xff] }
 0x246   : > { %v2198_v50 = vpop.f32.mrf.mxu0 }
 0x247   : > { %v2270_v62 = vadd.f32 %v2269_v27, %v2198_v50  ;;  %v3481_v27 = vld [vmem:[%s5049_s5 + $0x118] sm:$0xff]  ;;  %v3496_v50 = vld [vmem:[%s5049_s5 + $0x190] sm:$0xff] }
 0x25d   : > { %v2445_v14 = vpop.f32.mrf.mxu1 }
 0x25e   : > { %v2450_v31 = vadd.f32 %v2445_v14, %v2268_v61  ;;  %v3480_v14 = vld [vmem:[%s5049_s5 + $0x110] sm:$0xff]  ;;  %v3183_v61 = vld [vmem:[%s5051_s7 + $0x18] sm:$0xff] }
 0x25f   : > { %v2447_v51 = vpop.f32.mrf.mxu1 }
 0x260   : > { %v2451_v33 = vadd.f32 %v2447_v51, %v2270_v62  ;;  %v3479_v51 = vld [vmem:[%s5049_s5 + $0x108] sm:$0xff]  ;;  %v3182_v62 = vld [vmem:[%s5051_s7 + $0x10] sm:$0xff] }
 0x266   : > { %v2371_v52 = vpop.f32.mrf.mxu0 }
 0x267   : > { %v2376_v63 = vadd.f32 %v2371_v52, %v2125_v58  ;;  %v3495_v52 = vld [vmem:[%s5049_s5 + $0x188] sm:$0xff]  ;;  %v3186_v58 = vld [vmem:[%s5051_s7 + $0x30] sm:$0x3] }
 0x268   : > { %v2373_v54 = vpop.f32.mrf.mxu0 }
 0x269   : > { %v2377_v34 = vadd.f32 %v2373_v54, %v2127_v60  ;;  %v3494_v54 = vld [vmem:[%s5049_s5 + $0x180] sm:$0xff] }
 0x26a   : > { %v3184_v60 = vld [vmem:[%s5051_s7 + $0x20] sm:$0xff] }
 0x27f   : > { %v2625_v53 = vpop.f32.mrf.mxu1 }
 0x280   : > { %v2630_v38 = vadd.f32 %v2625_v53, %v2450_v31  ;;  %v3478_v53 = vld [vmem:[%s5049_s5 + $0x100] sm:$0xff] }
 0x281   : > { %v2627_v55 = vpop.f32.mrf.mxu1 }
 0x282   : > { %v2631_v39 = vadd.f32 %v2627_v55, %v2451_v33 }
 0x288   : > { %v2551_v56 = vpop.f32.mrf.mxu0 }
 0x289   : > { %v2556_v35 = vadd.f32 %v2551_v56, %v2376_v63  ;;  %v3181_v63 = vld [vmem:[%s5051_s7 + $0x8] sm:$0xff] }
 0x28a   : > { %v2553_v24 = vpop.f32.mrf.mxu0 }
 0x28b   : > { %v2557_v41 = vadd.f32 %v2553_v24, %v2377_v34  ;;  %v3180_v24 = vld [vmem:[%s5051_s7] sm:$0xff] }
 0x2a1   : > { %v2805_v59 = vpop.f32.mrf.mxu1 }
 0x2a2   : > { %v2810_v47 = vadd.f32 %v2805_v59, %v2630_v38  ;;  %v3185_v59 = vld [vmem:[%s5051_s7 + $0x28] sm:$0xff] }
 0x2a3   : > { %v2807_v36 = vpop.f32.mrf.mxu1 }
 0x2a4   : > { %v2811_v48 = vadd.f32 %v2807_v36, %v2631_v39 }
 0x2a9   : > { %v2731_v37 = vpop.f32.mrf.mxu0 }
 0x2aa   : > { %v2736_v44 = vadd.f32 %v2731_v37, %v2556_v35 }
 0x2ab   : > { %v2733_v46 = vpop.f32.mrf.mxu0 }
 0x2ac   : > { %v2737_v49 = vadd.f32 %v2733_v46, %v2557_v41  ;;  %v2813_v57 = vmax.f32 %v2736_v44, %v2810_v47  ;;  %v3178_v41 = vld [vmem:[%s5050_s6] sm:$0x1] }
 0x2ae   : > { %v2814_v40 = vmax.f32 %v2737_v49, %v2811_v48  ;;  %v3187_v48 = vld [vmem:[%s5052_s8] sm:$0x1] }
 0x2b0   : > { %v2815_v0 = vmax.f32 %v2813_v57, %v2814_v40 }
 0x2b2   : > { %v2822_v43 = vadd.f32 %v3461_v45, %v2815_v0 }
 0x2b4   : > { %v2823_v42 = vmax.f32 %v2822_v43, 0.0 }
 0x2b6   : > { %2824 = vst [vmem:[#allocation3] sm:$0xf] %v2823_v42 }
 0x2bd   : > { %v2842_v18 = vld [vmem:[#allocation3 + $0x1] sm:$0x1]  ;;  %v2825_v17 = vld [vmem:[#allocation3] sm:$0x1]  ;;  %v3000_v55 = vld [vmem:[#allocation3 + $0x2] sm:$0x1] }
 0x2be   : > { %3625 = vmatmul.mubr.f32.vlgmr.msra.gmra.mxu0 %v2842_v18  ;;  %3660 = vmatmul.mubr.f32.vlgmr.msra.gmra.mxu1 %v2825_v17  ;;  %v3089_v56 = vld [vmem:[#allocation3 + $0x3] sm:$0x1] }
 0x2bf   : > { %3663 = vmatpush3.msra.mxu0 %v3493_v20  ;;  %3698 = vmatpush3.msra.mxu1 %v3509_v32 }
 0x2c0   : > { %3664 = vmatprep.subr.mxu0 %v5157_v22  ;;  %3699 = vmatprep.subr.mxu1 %v5157_v22 }
 0x2c1   : > { %3665 = vmatpush3.msra.mxu0 %v3492_v16  ;;  %3700 = vmatpush3.msra.mxu1 %v3508_v13 }
 0x2c2   : > { %3666 = vmatprep.subr.mxu0 %v5157_v22  ;;  %3701 = vmatprep.subr.mxu1 %v5157_v22 }
 0x2c3   : > { %3667 = vmatpush3.msra.mxu0 %v3491_v12  ;;  %3702 = vmatpush3.msra.mxu1 %v3507_v11 }
 0x2c4   : > { %3668 = vmatprep.subr.mxu0 %v5157_v22  ;;  %3703 = vmatprep.subr.mxu1 %v5157_v22 }
 0x2c5   : > { %3669 = vmatpush3.msra.mxu0 %v3490_v8  ;;  %3704 = vmatpush3.msra.mxu1 %v3506_v10 }
 0x2c6   : > { %3670 = vmatprep.subr.mxu0 %v5157_v22  ;;  %3705 = vmatprep.subr.mxu1 %v5157_v22 }
 0x2c7   : > { %3671 = vmatpush3.msra.mxu0 %v3489_v15  ;;  %3706 = vmatpush3.msra.mxu1 %v3505_v7 }
 0x2c8   : > { %3672 = vmatprep.subr.mxu0 %v5157_v22  ;;  %3707 = vmatprep.subr.mxu1 %v5157_v22 }
 0x2c9   : > { %3673 = vmatpush3.msra.mxu0 %v3488_v6  ;;  %3708 = vmatpush3.msra.mxu1 %v3504_v3 }
 0x2ca   : > { %3674 = vmatprep.subr.mxu0 %v5157_v22  ;;  %3709 = vmatprep.subr.mxu1 %v5157_v22 }
 0x2cb   : > { %3675 = vmatpush3.msra.mxu0 %v3487_v5  ;;  %3710 = vmatpush3.msra.mxu1 %v3503_v9 }
 0x2cc   : > { %3676 = vmatprep.subr.mxu0 %v5157_v22  ;;  %3711 = vmatprep.subr.mxu1 %v5157_v22 }
 0x2cd   : > { %3677 = vmatpush3.msra.mxu0 %v3486_v19  ;;  %3712 = vmatpush3.msra.mxu1 %v3502_v23 }
 0x2ce   : > { %3678 = vmatprep.subr.mxu0 %v5157_v22  ;;  %3713 = vmatprep.subr.mxu1 %v5157_v22 }
 0x2cf   : > { %3679 = vmatpush3.msra.mxu0 %v3485_v2  ;;  %3714 = vmatpush3.msra.mxu1 %v3501_v1 }
 0x2d0   : > { %3680 = vmatprep.subr.mxu0 %v5157_v22  ;;  %3715 = vmatprep.subr.mxu1 %v5157_v22 }
 0x2d1   : > { %3681 = vmatpush3.msra.mxu0 %v3484_v4  ;;  %3716 = vmatpush3.msra.mxu1 %v3500_v25 }
 0x2d2   : > { %3682 = vmatprep.subr.mxu0 %v5157_v22  ;;  %3717 = vmatprep.subr.mxu1 %v5157_v22 }
 0x2d3   : > { %3683 = vmatpush3.msra.mxu0 %v3483_v26  ;;  %3718 = vmatpush3.msra.mxu1 %v3499_v28 }
 0x2d4   : > { %3684 = vmatprep.subr.mxu0 %v5157_v22  ;;  %3719 = vmatprep.subr.mxu1 %v5157_v22 }
 0x2d5   : > { %3685 = vmatpush3.msra.mxu0 %v3482_v29  ;;  %3720 = vmatpush3.msra.mxu1 %v3498_v30 }
 0x2d6   : > { %3686 = vmatprep.subr.mxu0 %v5157_v22  ;;  %3721 = vmatprep.subr.mxu1 %v5157_v22 }
 0x2d7   : > { %3687 = vmatpush3.msra.mxu0 %v3481_v27  ;;  %3722 = vmatpush3.msra.mxu1 %v3497_v21 }
 0x2d8   : > { %3688 = vmatprep.subr.mxu0 %v5157_v22  ;;  %3723 = vmatprep.subr.mxu1 %v5157_v22 }
 0x2d9   : > { %3689 = vmatpush3.msra.mxu0 %v3480_v14  ;;  %3724 = vmatpush3.msra.mxu1 %v3496_v50 }
 0x2da   : > { %3690 = vmatprep.subr.mxu0 %v5157_v22  ;;  %3725 = vmatprep.subr.mxu1 %v5157_v22 }
 0x2db   : > { %3691 = vmatpush3.msra.mxu0 %v3479_v51  ;;  %3726 = vmatpush3.msra.mxu1 %v3495_v52 }
 0x2dc   : > { %3692 = vmatprep.subr.mxu0 %v5157_v22  ;;  %3727 = vmatprep.subr.mxu1 %v5157_v22 }
 0x2dd   : > { %3693 = vmatpush3.msra.mxu0 %v3478_v53  ;;  %3694 = vmatprep.mubr.msk.f32.mxu0 %vm3903_vm2, %v5157_v22 }
 0x2de   : > { %3728 = vmatpush3.msra.mxu1 %v3494_v54  ;;  %3729 = vmatprep.mubr.msk.f32.mxu1 %vm3903_vm2, %v5157_v22 }
 0x2df   : > { %3695 = vmatmul.mubr.f32.vlgmr.msra.gmra.mxu0 %v3000_v55  ;;  %3730 = vmatmul.mubr.f32.vlgmr.msra.gmra.mxu1 %v3089_v56 }
 0x2e0   : > { %3732 = vmatprep.subr.mxu0 %v5157_v22  ;;  %3746 = vmatprep.mubr.msk.f32.mxu0 %vm3903_vm2, %v5157_v22 }
 0x2e1   : > { %3733 = vmatpush3.msk.msra.mxu0 %vm3192_vm3, %v3186_v58 }
 0x2e2   : > { %3734 = vmatprep.subr.mxu0 %v5157_v22 }
 0x2e3   : > { %3735 = vmatpush3.msra.mxu0 %v3185_v59 }
 0x2e4   : > { %3736 = vmatprep.subr.mxu0 %v5157_v22 }
 0x2e5   : > { %3737 = vmatpush3.msra.mxu0 %v3184_v60 }
 0x2e6   : > { %3738 = vmatprep.subr.mxu0 %v5157_v22 }
 0x2e7   : > { %3739 = vmatpush3.msra.mxu0 %v3183_v61 }
 0x2e8   : > { %3740 = vmatprep.subr.mxu0 %v5157_v22 }
 0x2e9   : > { %3741 = vmatpush3.msra.mxu0 %v3182_v62 }
 0x2ea   : > { %3742 = vmatprep.subr.mxu0 %v5157_v22 }
 0x2eb   : > { %3743 = vmatpush3.msra.mxu0 %v3181_v63 }
 0x2ec   : > { %3744 = vmatprep.subr.mxu0 %v5157_v22 }
 0x2ed   : > { %3745 = vmatpush3.msra.mxu0 %v3180_v24 }
 0x37e   : > { %v2926_v31 = vpop.f32.mrf.mxu0  ;;  %v2996_v33 = vpop.f32.mrf.mxu1 }
 0x37f   : > { %v2997_v36 = vadd.f32 %v2996_v33, %v2926_v31 }
 0x380   : > { %v3626_v34 = vpop.f32.mrf.mxu0  ;;  %v3661_v35 = vpop.f32.mrf.mxu1 }
 0x39f   : > { %v3084_v37 = vpop.f32.mrf.mxu0  ;;  %v3173_v38 = vpop.f32.mrf.mxu1 }
 0x3a0   : > { %v3088_v39 = vadd.f32 %v3084_v37, %v2997_v36 }
 0x3a1   : > { %v3696_v44 = vpop.f32.mrf.mxu0  ;;  %v3731_v22 = vpop.f32.mrf.mxu1 }
 0x3a2   : > { %v3177_v46 = vadd.f32 %v3173_v38, %v3088_v39 }
 0x3a4   : > { %v3179_v47 = vadd.f32 %v3178_v41, %v3177_v46 }
 0x3a6   : > { %3747 = vmatmul.mubr.msk.f32.vlgmr.msra.gmra.mxu0 %vm3188_vm4, %v3179_v47 }
 0x466   : > { %v3262_v49 = vpop.f32.mrf.mxu0 }
 0x467   : > { %v3263_v57 = vadd.f32 %v3262_v49, %v3187_v48 }
 0x468   : > { %v3748_v40 = vpop.f32.mrf.mxu0 }
 0x469   : > { %v3266_v45 = vsub.f32 0.0, %v3263_v57 }
 0x46b   : > { %v3267_v0 = vmul.f32 1.442695, %v3266_v45 }
 0x46d   : > { %3803 = vpow2.f32 %v3267_v0 }
 0x47a   : > { %v3804_v43 = vpop.eup %3803 }
 0x47b   : > { %v3269_v42 = vadd.f32 1.0, %v3804_v43 }
 0x47d   : > { %3805 = vrcp.f32 %v3269_v42 }
 0x48a   : > { %v3806_v20 = vpop.eup %3805 }
 0x48b   : > { %3273 = vst.msk [vmem:[%s339_s16] sm:$0x1] %vm3272_vm5, %v3806_v20 }
 0x48c   : > { %3846 = shalt.err (!%p3843_p0)
}
 0x48d   : > { %s3847_s28 = scalar_lea.hbm %s5009_s21, 16  ;;  %s3851_s16 = scalar_lea.hbm %s5053_s9, 32 }
 0x48e   : > { %p3848_p1 = scmp.ne.s32.totalorder %s5009_s21, %s3847_s28  ;;  %p3852_p4 = scmp.lt.s32.totalorder %s5009_s21, %s5053_s9 }
 0x48f   : > { %p3853_p7 = scmp.lt.s32.totalorder %s3851_s16, %s3847_s28 }
 0x490   : > { %p3849_p2 = pnand %p3848_p1, %p3993_p5 }
 0x491   : > { %p3854_p8 = por %p3853_p7, %p3852_p4 }
 0x492   : > { %p3850_p3 = pneg %p3849_p2 }
 0x494   : > { %p3855_p6 = pnand %p3854_p8, %p3850_p3 }
 0x496   : > { %3858 = shalt.err (!%p3855_p6)
}
 0x497   : > { %3753 = dma.vmem_to_hbm [thread:$0]  (%p3993_p5), %s3288_s17, 16, %s5009_s21, %s3275_s25  }
 0x498 PF: > { %p3765_p9 = scmp.ge.s32.totalorder %s3897_s12, 2  ;;  %s3299_s26 = sand.u32 1, %s3885_s30  }
 0x499   : > { %p5207_p10 = scmp.ne.s32.totalorder %s5106_s20, 0  ;;  %s3300_s24 = scalar_lea.sflag [#allocation6], %s3299_s26 }
 0x49b   : > { %p3760_p11 = pnand %p3765_p9, %p5207_p10 }
 0x49d   : > { %p3761_p12 = pneg %p3760_p11 }
 0x49f   : > { %3880 = dma.done.wait (%p3761_p12), %s3300_s24, 16  }
 0x4a0   : > { %3882 = vsyncadd (%p3761_p12), %s3300_s24, 4294967280  ;;  %p20_p13 = scmp.ge.s32.totalorder %s3980_s15, 4   ;;  %s5208_s30 = smov %s3889_s10 }
 0x4a1   : > { %s5209_s10 = smov %s3893_s11  ;;  %s5210_s11 = smov %s3991_s18 }
 0x4a2   : > { %s5211_s12 = smov %s3980_s15  ;;  %22 = sbr.rel (!%p20_p13) target bundleno = 4 (0x4), region = 111 }
 0x4a7   :  { %3304 = vsyncpa [#allocation5], 1 }
 0x4a8   :  { %3306 = vsyncpa [#allocation5 + $0x1], 1 }
 0x4a9   :  { %3307 = vsyncpa [#allocation6], 1 }
 0x4aa   :  { %3309 = vsyncpa [#allocation6 + $0x1], 1 }

</bundles_post_ra>
